<compile_context>
chip_gen: v7x
topology: tpu7x:2x2x1
jax: 0.10.0
libtpu: 0.0.40
codegen_flags: <defaults>
</compile_context>

<pallas_src>
import jax
import jax.numpy as jnp
from jax.experimental import pallas as pl
from jax.experimental.pallas import tpu as pltpu


def _round_up(a, b):
    return (a + b - 1) // b * b


def _choose_tile_n(n, tile_n_max=4096, min_steps=4, row_align=16):
    """Pick a row tile: big enough to amortize per-step overhead, small enough
    to keep >= `min_steps` grid steps (v7x 2-TC megacore balance).
    row_align=16 keeps the bf16 output block sublane-packed."""
    if n <= 256:
        return n                       # single full-extent block (no alignment needed)
    target = _round_up(pl.cdiv(n, min_steps), row_align)
    return max(256, min(tile_n_max, target, _round_up(n, row_align)))


def _linear_bn_relu_kernel(x_ref, ws_ref, shift_ref, y_ref):
    # x_ref:     (tile_n, c_in) f32  -> cast to bf16 on the VPU (hidden under DMA)
    # ws_ref:    (c_in, c_out)  bf16 = W^T with the BN scale folded in (resident)
    # shift_ref: (1, c_out)     f32  folded BN shift (resident)
    # y_ref:     (tile_n, c_out) bf16 (lane-dense, 128-wide stores)
    x = x_ref[...].astype(jnp.bfloat16)
    h = jnp.dot(x, ws_ref[...], preferred_element_type=jnp.float32)
    y_ref[...] = jnp.maximum(h + shift_ref[...], 0.0).astype(y_ref.dtype)


def linear_bn_relu(x, W, gamma, beta, rmean, rvar, eps=1e-5, tile_n=None,
                   out_dtype=jnp.bfloat16):
    """ReLU(BN(x @ W.T)) with BatchNorm1d in inference mode.

    x: [N, C_in] f32, W: [C_out, C_in] f32 (PyTorch Linear weight, bias=False).
    """
    N, c_in = x.shape
    c_out = W.shape[0]
    if tile_n is None:
        tile_n = _choose_tile_n(N)
    else:
        tile_n = min(tile_n, _round_up(N, 16))

    # Fold BN running stats into the constant weight/shift once (wrapper-side,
    # negligible cost: weights are tiny vs. x / y traffic).
    inv_std = 1.0 / jnp.sqrt(rvar.astype(jnp.float32) + eps)
    scale = (gamma.astype(jnp.float32) * inv_std)                     # (c_out,)
    shift = (beta.astype(jnp.float32)
             - rmean.astype(jnp.float32) * scale).reshape(1, c_out)
    ws = (W.T.astype(jnp.float32) * scale[None, :]).astype(jnp.bfloat16)

    grid = (pl.cdiv(N, tile_n),)       # ragged last block handled by Pallas masking
    return pl.pallas_call(
        _linear_bn_relu_kernel,
        out_shape=jax.ShapeDtypeStruct((N, c_out), out_dtype),
        grid=grid,
        in_specs=[
            pl.BlockSpec((tile_n, c_in), lambda i: (i, 0)),   # streamed x row tile
            pl.BlockSpec((c_in, c_out), lambda i: (0, 0)),    # W^T*scale (resident)
            pl.BlockSpec((1, c_out), lambda i: (0, 0)),       # BN shift (resident)
        ],
        out_specs=pl.BlockSpec((tile_n, c_out), lambda i: (i, 0)),
        compiler_params=pltpu.CompilerParams(
            dimension_semantics=("parallel",)),               # 2-TC shard on v7x
    )(x, ws, shift)


def symmetric_transition_down(p, x, o, W, gamma, beta, rmean, rvar,
                              eps=1e-5, stride=1, tile_n=None,
                              out_dtype=jnp.bfloat16):
    """Forward of SymmetricTransitionDownBlock. Returns (p, y, o)."""
    if stride != 1:
        # TODO(synk): furthestsampling / queryandgroup (KNN) branch not implemented.
        raise NotImplementedError("stride != 1 branch requires pointops (FPS/KNN)")
    y = linear_bn_relu(x, W, gamma, beta, rmean, rvar, eps=eps,
                       tile_n=tile_n, out_dtype=out_dtype)
    return p, y, o


def reference_stride1(x, W, gamma, beta, rmean, rvar, eps=1e-5):
    """Pure-JAX f32 mirror of the PyTorch forward (stride==1, BN in eval)."""
    h = x @ W.T
    h = (h - rmean) / jnp.sqrt(rvar + eps) * gamma + beta
    return jnp.maximum(h, 0.0)


if __name__ == "__main__":
    key = jax.random.PRNGKey(0)
    ks = jax.random.split(key, 7)

    in_planes = 64
    out_planes = 128      # lane-dense output (multiple of 128)
    N = 3900              # not a multiple of the chosen tile -> exercises ragged last block
    o = jnp.array([2048, 3900], dtype=jnp.int32)   # batch offsets (pass-through)

    p = jax.random.normal(ks[0], (N, 3), jnp.float32)
    x = jax.random.normal(ks[1], (N, in_planes), jnp.float32)

    # linear2: Linear(in_planes, out_planes, bias=False) + BatchNorm1d + ReLU
    W = jax.random.normal(ks[2], (out_planes, in_planes), jnp.float32) * 0.1
    gamma = 1.0 + 0.1 * jax.random.normal(ks[3], (out_planes,), jnp.float32)
    beta = 0.05 * jax.random.normal(ks[4], (out_planes,), jnp.float32)
    rmean = 0.1 * jax.random.normal(ks[5], (out_planes,), jnp.float32)
    rvar = jnp.abs(jax.random.normal(ks[6], (out_planes,), jnp.float32)) + 0.5

    p_out, y, o_out = symmetric_transition_down(
        p, x, o, W, gamma, beta, rmean, rvar, stride=1)
    y = jax.block_until_ready(y)

    y_ref = reference_stride1(x, W, gamma, beta, rmean, rvar)
    assert y.shape == (N, out_planes)
    assert y.dtype == jnp.bfloat16
    # bf16 MXU inputs + bf16 output vs. the pure-f32 reference.
    y_f32 = y.astype(jnp.float32)
    max_err = float(jnp.max(jnp.abs(y_f32 - y_ref)))
    assert jnp.allclose(y_f32, y_ref, atol=1e-1, rtol=5e-2), max_err

    print("KERNEL_OK")
</pallas_src>

<mosaic_0001>
module attributes {stable_mosaic.version = 11 : i64} {
  func.func @_linear_bn_relu_kernel(%arg0: i32, %arg1: memref<976x64xf32, #tpu.memory_space<vmem>>, %arg2: memref<64x128xbf16, #tpu.memory_space<vmem>>, %arg3: memref<1x128xf32, #tpu.memory_space<vmem>>, %arg4: memref<976x128xbf16, #tpu.memory_space<vmem>>) attributes {dimension_semantics = [#tpu.dimension_semantics<parallel>], iteration_bounds = array<i64: 4>, scalar_prefetch = 0 : i64, scratch_operands = 0 : i64, tpu.core_type = #tpu.core_type<tc>, window_params = [{transform_indices = @transform_0, window_bounds = array<i64: 976, 64>}, {pipeline_mode = #tpu.pipeline_mode<synchronous>, transform_indices = @transform_1, window_bounds = array<i64: 64, 128>}, {pipeline_mode = #tpu.pipeline_mode<synchronous>, transform_indices = @transform_2, window_bounds = array<i64: 1, 128>}, {transform_indices = @transform_3, window_bounds = array<i64: 976, 128>}]} {
    %c0 = arith.constant 0 : index
    %c0_0 = arith.constant 0 : index
    %0 = vector.load %arg1[%c0, %c0_0] : memref<976x64xf32, #tpu.memory_space<vmem>>, vector<976x64xf32>
    %1 = arith.truncf %0 : vector<976x64xf32> to vector<976x64xbf16>
    %c0_1 = arith.constant 0 : index
    %c0_2 = arith.constant 0 : index
    %2 = vector.load %arg2[%c0_1, %c0_2] : memref<64x128xbf16, #tpu.memory_space<vmem>>, vector<64x128xbf16>
    %cst = arith.constant dense<0.000000e+00> : vector<976x128xf32>
    %3 = tpu.matmul %1, %2, %cst {dimension_numbers = #tpu.dot_dimension_numbers<[1], [0], [0], [1], [0, 0, 1, 1], [], []>} : vector<976x64xbf16>, vector<64x128xbf16>, vector<976x128xf32> -> vector<976x128xf32>
    %c0_3 = arith.constant 0 : index
    %c0_4 = arith.constant 0 : index
    %4 = vector.load %arg3[%c0_3, %c0_4] : memref<1x128xf32, #tpu.memory_space<vmem>>, vector<1x128xf32>
    %5 = vector.broadcast %4 : vector<1x128xf32> to vector<976x128xf32>
    %6 = arith.addf %3, %5 : vector<976x128xf32>
    %cst_5 = arith.constant 0.000000e+00 : f32
    %7 = vector.broadcast %cst_5 : f32 to vector<976x128xf32>
    %8 = arith.maximumf %6, %7 : vector<976x128xf32>
    %9 = arith.truncf %8 : vector<976x128xf32> to vector<976x128xbf16>
    %c0_6 = arith.constant 0 : index
    %c0_7 = arith.constant 0 : index
    %10 = vector.load %arg4[%c0_6, %c0_7] : memref<976x128xbf16, #tpu.memory_space<vmem>>, vector<976x128xbf16>
    tpu.vector_store %arg4[%c0_6, %c0_7], %9 {strides = array<i32>} : memref<976x128xbf16, #tpu.memory_space<vmem>>, vector<976x128xbf16>,
    return
  }
  func.func @transform_0(%arg0: i32) -> (i32, i32) {
    %c0_i32 = arith.constant 0 : i32
    %c0_i32_0 = arith.constant 0 : i32
    return %arg0, %c0_i32 : i32, i32
  }
  func.func @transform_1(%arg0: i32) -> (i32, i32) {
    %c0_i32 = arith.constant 0 : i32
    %c0_i32_0 = arith.constant 0 : i32
    %c0_i32_1 = arith.constant 0 : i32
    return %c0_i32, %c0_i32_0 : i32, i32
  }
  func.func @transform_2(%arg0: i32) -> (i32, i32) {
    %c0_i32 = arith.constant 0 : i32
    %c0_i32_0 = arith.constant 0 : i32
    %c0_i32_1 = arith.constant 0 : i32
    return %c0_i32, %c0_i32_0 : i32, i32
  }
  func.func @transform_3(%arg0: i32) -> (i32, i32) {
    %c0_i32 = arith.constant 0 : i32
    %c0_i32_0 = arith.constant 0 : i32
    return %arg0, %c0_i32 : i32, i32
  }
}

</mosaic_0001>

<bundles_post_ra>
// kernel: tpu_custom_call.1
= control target key start
LH: loop header
LB: loop body
LE: loop exit
PB: predicated region body
PF: predicated region fallthrough
CT: control target
= control target key end

     0   :  { %8 = vsyncpa [#allocation3], 0  ;;  %s3684_s0 = inlined_call_operand.vmem [shape: f32[3900,64], index: 0, kind: input, shape index: {}]   ;;  %s3685_s1 = inlined_call_operand.vmem [shape: bf16[64,128], index: 1, kind: input, shape index: {}]   ;;  %s3686_s2 = inlined_call_operand.vmem [shape: f32[1,128], index: 2, kind: input, shape index: {}]   ;;  %s3687_s3 = inlined_call_operand.hbm [shape: bf16[3900,128], index: 3, kind: output, shape index: {}]  }
   0x1   :  { %10 = vsyncpa [#allocation3 + $0x1], 0  ;;  %s3055_s12 = smov 0   ;;  %s3057_s13 = smov 0  }
   0x2   :  { %s3059_s14 = smov 0   ;;  %s3061_s15 = smov 0  }
   0x3 LB: > { %s3076_s16 = sadd.s32 4294967295, %s3028_s15   ;;  %s1908_s17 = sadd.s32 4294967294, %s3028_s15   ;;  %s3028_s15 = sphi %s3061_s15, %s3693_s15   ;;  %s3024_s14 = sphi %s3059_s14, %s3692_s14   ;;  %s3020_s13 = sphi %s3057_s13, %s3691_s13   ;;  %s3016_s12 = sphi %s3055_s12, %s3690_s12  }
   0x4   : > { %s3080_s18 = sadd.s32 1, %s3028_s15   ;;  %s91_s19 = sadd.s32 1, %s3024_s14 }
   0x5   : > { %s88_s20 = ssub.s32 %s3028_s15, %s3080_s18  ;;  %p101_p0 = scmp.ne.s32.totalorder %s3024_s14, %s3020_s13 }
   0x6   : > { %p89_p1 = scmp.eq.s32.totalorder %s88_s20, 0  ;;  %p102_p2 = scmp.eq.s32.totalorder %s3076_s16, 3 }
   0x7   : > { %p107_p3 = scmp.ne.s32.totalorder %s3020_s13, %s3016_s12  ;;  %p108_p4 = scmp.eq.s32.totalorder %s1908_s17, 3 }
   0x8   : > { %s3091_s21 = scalar_select %p89_p1, %s3024_s14, %s91_s19  }
   0x9   : > { %p3093_p5 = por %p102_p2, %p101_p0  ;;  %p3097_p6 = por %p108_p4, %p107_p3 }
   0xa   : > { %p1911_p7 = scmp.ge.s32.totalorder %s3028_s15, 1  ;;  %p141_p8 = scmp.lt.s32.totalorder %s3028_s15, 5 }
   0xc   : > { %p142_p9 = pnand %p1911_p7, %p141_p8 }
   0xd   : > { %v2961_v0 = vld [vmem:[%s3685_s1] sm:$0xff] (!%p142_p9)   ;;  %v3030_v1 = vmov (!%p142_p9), 0.0   ;;  %v2962_v2 = vld [vmem:[%s3685_s1 + $0x8] sm:$0xff] (!%p142_p9)   ;;  %s165_s28 = smul.u32 (!%p142_p9), 122, %s3076_s16  ;;  %vm3031_vm0 = vmmov (!%p142_p9), 0   ;;  %v2963_v3 = vld [vmem:[%s3685_s1 + $0x10] sm:$0xff] (!%p142_p9)  }
   0xe   : > { %145 = sbr.rel (%p142_p9) target bundleno = 505 (0x1f9), region = 32  ;;  %2657 = vmatprep.subr.bf16.mxu0 (!%p142_p9), %v3030_v1  ;;  %2909 = vmatprep.subr.bf16.mxu1 (!%p142_p9), %v3030_v1  ;;  %v2964_v4 = vld [vmem:[%s3685_s1 + $0x18] sm:$0xff] (!%p142_p9)   ;;  %vm395_vm1 = vcmask (!%p142_p9), 523264   ;;  %s162_s17 = sand.u32 (!%p142_p9), 1, %s3020_s13  }
   0xf   : > { %2658 = vmatpush3.bf16.msra.mxu0 (!%p142_p9), %v2961_v0  ;;  %2913 = vmatpush3.bf16.msra.mxu1 (!%p142_p9), %v2961_v0  ;;  %p166_p10 = scmp.lt.s32.totalorder (!%p142_p9), %s165_s28, 487  ;;  %s2917_s19 = smul.u32 (!%p142_p9), 488, %s162_s17 }
  0x10   : > { %2659 = vmatprep.subr.bf16.mxu0 (!%p142_p9), %v3030_v1  ;;  %2910 = vmatprep.subr.bf16.mxu1 (!%p142_p9), %v3030_v1  ;;  %s2226_s26 = smul.u32 (!%p142_p9), 7808, %s3076_s16  ;;  %s3643_s16 = scalar_lea.sflag (!%p142_p9), [#allocation3], %s162_s17 }
  0x11   : > { %2665 = vmatprep.mubr.msk.bf16.mxu0 (!%p142_p9), %vm3031_vm0, %v3030_v1  ;;  %2789 = vmatprep.mubr.msk.bf16.mxu1 (!%p142_p9), %vm3031_vm0, %v3030_v1  ;;  %s3429_s20 = scalar_lea.vmem (!%p142_p9), [#allocation2], %s2917_s19  ;;  %s3032_s5 = smov (!%p142_p9), [#allocation2]  }
  0x12   : > { %s1846_s27 = sshll.u32 (!%p142_p9), %s3429_s20, 4  ;;  %s3636_s30 = scalar_lea.hbm (!%p142_p9), %s3687_s3, %s2226_s26  ;;  %s3638_s27 = int_to_ptr.vmem [resolvable:$true] %s1846_s27 }
  0x13   : > { %2660 = vmatpush3.bf16.msra.mxu0 (!%p142_p9), %v2962_v2  ;;  %2914 = vmatpush3.bf16.msra.mxu1 (!%p142_p9), %v2962_v2  ;;  %s2970_s6 = sshll.u32 (!%p142_p9), %s3032_s5, 4  ;;  %s2971_s6 = int_to_ptr.vmem [resolvable:$false] %s2970_s6 }
  0x14   : > { %2661 = vmatprep.subr.bf16.mxu0 (!%p142_p9), %v3030_v1  ;;  %2911 = vmatprep.subr.bf16.mxu1 (!%p142_p9), %v3030_v1  ;;  %s2972_s7 = scalar_lea.vmem (!%p142_p9), %s2971_s6, 15616  ;;  %p2973_p0 = scmp.lt.s32.totalorder (!%p142_p9), %s3638_s27, %s2971_s6 }
  0x15   : > { %s3695_s28 = smov (!%p166_p10, %s165_s28), 487 }
  0x16   : > { %s1912_s4 = sshll.u32 %s3695_s28, 3 }
  0x17   : > { %s3129_s9 = scalar_lea.vmem %s3684_s0, %s1912_s4  ;;  %2662 = vmatpush3.bf16.msra.mxu0 %v2963_v3  ;;  %2915 = vmatpush3.bf16.msra.mxu1 %v2963_v3  ;;  %s2966_s4 = scalar_lea.vmem %s3638_s27, 7808 }
  0x18   : > { %v173_v5 = vld [vmem:[%s3129_s9] sm:$0xff]  ;;  %v174_v6 = vld [vmem:[%s3129_s9 + $0x8] sm:$0xff]  ;;  %v235_v7 = vld [vmem:[%s3129_s9 + $0x1f0] sm:$0xff]  ;;  %2663 = vmatprep.subr.bf16.mxu0 %v3030_v1  ;;  %2912 = vmatprep.subr.bf16.mxu1 %v3030_v1  ;;  %p2967_p11 = scmp.ne.s32.totalorder %s3638_s27, %s2966_s4  ;;  %p2974_p1 = scmp.lt.s32.totalorder %s2972_s7, %s2966_s4 }
  0x19   : > { %v236_v8 = vld [vmem:[%s3129_s9 + $0x1f8] sm:$0xff]  ;;  %v295_v9 = vpack.c.bf16 %v174_v6, %v173_v5  ;;  %v175_v11 = vld [vmem:[%s3129_s9 + $0x10] sm:$0xff]  ;;  %v237_v13 = vld [vmem:[%s3129_s9 + $0x200] sm:$0xff] }
  0x1a   : > { %v326_v10 = vpack.c.bf16 %v236_v8, %v235_v7  ;;  %v176_v12 = vld [vmem:[%s3129_s9 + $0x18] sm:$0xff]  ;;  %v238_v14 = vld [vmem:[%s3129_s9 + $0x208] sm:$0xff]  ;;  %v177_v17 = vld [vmem:[%s3129_s9 + $0x20] sm:$0xff]  ;;  %p2968_p12 = pnand %p2967_p11, %p3093_p5  ;;  %p2975_p2 = por %p2974_p1, %p2973_p0 }
  0x1b   : > { %2664 = vmatpush3.bf16.msra.mxu0 %v2964_v4  ;;  %2916 = vmatpush3.bf16.msra.mxu1 %v2964_v4  ;;  %v296_v15 = vpack.c.bf16 %v176_v12, %v175_v11  ;;  %v327_v16 = vpack.c.bf16 %v238_v14, %v237_v13  ;;  %v178_v18 = vld [vmem:[%s3129_s9 + $0x28] sm:$0xff]  ;;  %v239_v19 = vld [vmem:[%s3129_s9 + $0x210] sm:$0xff]  ;;  %v240_v20 = vld [vmem:[%s3129_s9 + $0x218] sm:$0xff] }
  0x1c   : > { %v297_v21 = vpack.c.bf16 %v178_v18, %v177_v17  ;;  %v328_v22 = vpack.c.bf16 %v240_v20, %v239_v19  ;;  %v179_v23 = vld [vmem:[%s3129_s9 + $0x30] sm:$0xff]  ;;  %v180_v24 = vld [vmem:[%s3129_s9 + $0x38] sm:$0xff]  ;;  %v241_v25 = vld [vmem:[%s3129_s9 + $0x220] sm:$0xff]  ;;  %p2969_p13 = pneg %p2968_p12 }
  0x1d   : > { %v242_v26 = vld [vmem:[%s3129_s9 + $0x228] sm:$0xff]  ;;  %v298_v27 = vpack.c.bf16 %v180_v24, %v179_v23  ;;  %v181_v29 = vld [vmem:[%s3129_s9 + $0x40] sm:$0xff]  ;;  %v243_v31 = vld [vmem:[%s3129_s9 + $0x230] sm:$0xff] }
  0x1e   : > { %2666 = vmatmul.mubr.msk.bf16.vlgmr.msra.gmra.mrb[0].mxu0 %vm395_vm1, %v295_v9  ;;  %2790 = vmatmul.mubr.msk.bf16.vlgmr.msra.gmra.mrb[0].mxu1 %vm395_vm1, %v326_v10  ;;  %v329_v28 = vpack.c.bf16 %v242_v26, %v241_v25  ;;  %v182_v30 = vld [vmem:[%s3129_s9 + $0x48] sm:$0xff]  ;;  %v244_v32 = vld [vmem:[%s3129_s9 + $0x238] sm:$0xff]  ;;  %v183_v35 = vld [vmem:[%s3129_s9 + $0x50] sm:$0xff]  ;;  %p2976_p3 = pnand %p2975_p2, %p2969_p13 }
  0x1f   : > { %2669 = vmatprep.mubr.msk.bf16.mxu0 %vm3031_vm0, %v3030_v1  ;;  %2793 = vmatprep.mubr.msk.bf16.mxu1 %vm3031_vm0, %v3030_v1  ;;  %v299_v33 = vpack.c.bf16 %v182_v30, %v181_v29  ;;  %v330_v34 = vpack.c.bf16 %v244_v32, %v243_v31  ;;  %v184_v36 = vld [vmem:[%s3129_s9 + $0x58] sm:$0xff]  ;;  %v245_v37 = vld [vmem:[%s3129_s9 + $0x240] sm:$0xff]  ;;  %v246_v38 = vld [vmem:[%s3129_s9 + $0x248] sm:$0xff] }
  0x20   : > { %v300_v39 = vpack.c.bf16 %v184_v36, %v183_v35  ;;  %v331_v40 = vpack.c.bf16 %v246_v38, %v245_v37  ;;  %v185_v41 = vld [vmem:[%s3129_s9 + $0x60] sm:$0xff]  ;;  %v186_v42 = vld [vmem:[%s3129_s9 + $0x68] sm:$0xff]  ;;  %v247_v43 = vld [vmem:[%s3129_s9 + $0x250] sm:$0xff] }
  0x21   : > { %v248_v44 = vld [vmem:[%s3129_s9 + $0x258] sm:$0xff]  ;;  %v301_v45 = vpack.c.bf16 %v186_v42, %v185_v41  ;;  %v187_v47 = vld [vmem:[%s3129_s9 + $0x70] sm:$0xff]  ;;  %v249_v49 = vld [vmem:[%s3129_s9 + $0x260] sm:$0xff] }
  0x22   : > { %v332_v46 = vpack.c.bf16 %v248_v44, %v247_v43  ;;  %v188_v48 = vld [vmem:[%s3129_s9 + $0x78] sm:$0xff]  ;;  %v250_v50 = vld [vmem:[%s3129_s9 + $0x268] sm:$0xff]  ;;  %v189_v53 = vld [vmem:[%s3129_s9 + $0x80] sm:$0xff] }
  0x23   : > { %v302_v51 = vpack.c.bf16 %v188_v48, %v187_v47  ;;  %v333_v52 = vpack.c.bf16 %v250_v50, %v249_v49  ;;  %v190_v54 = vld [vmem:[%s3129_s9 + $0x88] sm:$0xff]  ;;  %v251_v55 = vld [vmem:[%s3129_s9 + $0x270] sm:$0xff]  ;;  %v252_v56 = vld [vmem:[%s3129_s9 + $0x278] sm:$0xff] }
  0x24   : > { %v303_v57 = vpack.c.bf16 %v190_v54, %v189_v53  ;;  %v334_v58 = vpack.c.bf16 %v252_v56, %v251_v55  ;;  %v191_v59 = vld [vmem:[%s3129_s9 + $0x90] sm:$0xff]  ;;  %v192_v60 = vld [vmem:[%s3129_s9 + $0x98] sm:$0xff]  ;;  %v253_v61 = vld [vmem:[%s3129_s9 + $0x280] sm:$0xff] }
  0x25   : > { %v254_v62 = vld [vmem:[%s3129_s9 + $0x288] sm:$0xff]  ;;  %v304_v63 = vpack.c.bf16 %v192_v60, %v191_v59  ;;  %v193_v2 = vld [vmem:[%s3129_s9 + $0xa0] sm:$0xff]  ;;  %v255_v4 = vld [vmem:[%s3129_s9 + $0x290] sm:$0xff] }
  0x26   : > { %2670 = vmatmul.mubr.msk.bf16.gmra.mrb[4].mxu0 %vm395_vm1, %v296_v15  ;;  %2794 = vmatmul.mubr.msk.bf16.gmra.mrb[4].mxu1 %vm395_vm1, %v327_v16  ;;  %v335_v0 = vpack.c.bf16 %v254_v62, %v253_v61  ;;  %v194_v3 = vld [vmem:[%s3129_s9 + $0xa8] sm:$0xff]  ;;  %v256_v5 = vld [vmem:[%s3129_s9 + $0x298] sm:$0xff]  ;;  %v195_v8 = vld [vmem:[%s3129_s9 + $0xb0] sm:$0xff] }
  0x27   : > { %2673 = vmatprep.mubr.msk.bf16.mxu0 %vm3031_vm0, %v3030_v1  ;;  %2797 = vmatprep.mubr.msk.bf16.mxu1 %vm3031_vm0, %v3030_v1  ;;  %v305_v6 = vpack.c.bf16 %v194_v3, %v193_v2  ;;  %v336_v7 = vpack.c.bf16 %v256_v5, %v255_v4  ;;  %v196_v9 = vld [vmem:[%s3129_s9 + $0xb8] sm:$0xff]  ;;  %v257_v10 = vld [vmem:[%s3129_s9 + $0x2a0] sm:$0xff]  ;;  %v258_v11 = vld [vmem:[%s3129_s9 + $0x2a8] sm:$0xff] }
  0x28   : > { %v306_v12 = vpack.c.bf16 %v196_v9, %v195_v8  ;;  %v337_v13 = vpack.c.bf16 %v258_v11, %v257_v10  ;;  %v197_v14 = vld [vmem:[%s3129_s9 + $0xc0] sm:$0xff]  ;;  %v198_v15 = vld [vmem:[%s3129_s9 + $0xc8] sm:$0xff]  ;;  %v259_v16 = vld [vmem:[%s3129_s9 + $0x2b0] sm:$0xff] }
  0x29   : > { %v260_v17 = vld [vmem:[%s3129_s9 + $0x2b8] sm:$0xff]  ;;  %v307_v18 = vpack.c.bf16 %v198_v15, %v197_v14  ;;  %v199_v20 = vld [vmem:[%s3129_s9 + $0xd0] sm:$0xff]  ;;  %v262_v23 = vld [vmem:[%s3129_s9 + $0x2c8] sm:$0xff] }
  0x2a   : > { %v338_v19 = vpack.c.bf16 %v260_v17, %v259_v16  ;;  %v201_v26 = vld [vmem:[%s3129_s9 + $0xe0] sm:$0xff]  ;;  %v264_v29 = vld [vmem:[%s3129_s9 + $0x2d8] sm:$0xff]  ;;  %v203_v32 = vld [vmem:[%s3129_s9 + $0xf0] sm:$0xff] }
  0x2b   : > { %v266_v35 = vld [vmem:[%s3129_s9 + $0x2e8] sm:$0xff]  ;;  %v205_v38 = vld [vmem:[%s3129_s9 + $0x100] sm:$0xff]  ;;  %v268_v41 = vld [vmem:[%s3129_s9 + $0x2f8] sm:$0xff] }
  0x2c   : > { %v207_v44 = vld [vmem:[%s3129_s9 + $0x110] sm:$0xff]  ;;  %v270_v47 = vld [vmem:[%s3129_s9 + $0x308] sm:$0xff]  ;;  %v209_v50 = vld [vmem:[%s3129_s9 + $0x120] sm:$0xff] }
  0x2d   : > { %v272_v53 = vld [vmem:[%s3129_s9 + $0x318] sm:$0xff]  ;;  %v211_v56 = vld [vmem:[%s3129_s9 + $0x130] sm:$0xff]  ;;  %v274_v59 = vld [vmem:[%s3129_s9 + $0x328] sm:$0xff] }
  0x2e   : > { %2674 = vmatmul.mubr.msk.bf16.gmra.mrb[8].mxu0 %vm395_vm1, %v297_v21  ;;  %2798 = vmatmul.mubr.msk.bf16.gmra.mrb[8].mxu1 %vm395_vm1, %v328_v22  ;;  %v200_v21 = vld [vmem:[%s3129_s9 + $0xd8] sm:$0xff]  ;;  %v261_v22 = vld [vmem:[%s3129_s9 + $0x2c0] sm:$0xff]  ;;  %v215_v5 = vld [vmem:[%s3129_s9 + $0x150] sm:$0xff] }
  0x2f   : > { %2677 = vmatprep.mubr.msk.bf16.mxu0 %vm3031_vm0, %v3030_v1  ;;  %2801 = vmatprep.mubr.msk.bf16.mxu1 %vm3031_vm0, %v3030_v1  ;;  %v308_v24 = vpack.c.bf16 %v200_v21, %v199_v20  ;;  %v339_v25 = vpack.c.bf16 %v262_v23, %v261_v22  ;;  %v213_v62 = vld [vmem:[%s3129_s9 + $0x140] sm:$0xff]  ;;  %v276_v2 = vld [vmem:[%s3129_s9 + $0x338] sm:$0xff]  ;;  %v278_v8 = vld [vmem:[%s3129_s9 + $0x348] sm:$0xff] }
  0x30   : > { %v217_v11 = vld [vmem:[%s3129_s9 + $0x160] sm:$0xff]  ;;  %v280_v14 = vld [vmem:[%s3129_s9 + $0x358] sm:$0xff]  ;;  %v219_v17 = vld [vmem:[%s3129_s9 + $0x170] sm:$0xff] }
  0x31   : > { %v282_v20 = vld [vmem:[%s3129_s9 + $0x368] sm:$0xff]  ;;  %v221_v23 = vld [vmem:[%s3129_s9 + $0x180] sm:$0xff] }
  0x36   : > { %2678 = vmatmul.mubr.msk.bf16.gmra.mrb[12].mxu0 %vm395_vm1, %v298_v27  ;;  %2802 = vmatmul.mubr.msk.bf16.gmra.mrb[12].mxu1 %vm395_vm1, %v329_v28  ;;  %v202_v27 = vld [vmem:[%s3129_s9 + $0xe8] sm:$0xff]  ;;  %v263_v28 = vld [vmem:[%s3129_s9 + $0x2d0] sm:$0xff] }
  0x37   : > { %2681 = vmatprep.mubr.msk.bf16.mxu0 %vm3031_vm0, %v3030_v1  ;;  %2805 = vmatprep.mubr.msk.bf16.mxu1 %vm3031_vm0, %v3030_v1  ;;  %v309_v30 = vpack.c.bf16 %v202_v27, %v201_v26  ;;  %v340_v31 = vpack.c.bf16 %v264_v29, %v263_v28  ;;  %v284_v26 = vld [vmem:[%s3129_s9 + $0x378] sm:$0xff]  ;;  %v223_v29 = vld [vmem:[%s3129_s9 + $0x190] sm:$0xff] }
  0x3e   : > { %2682 = vmatmul.mubr.msk.bf16.gmra.mrb[16].mxu0 %vm395_vm1, %v299_v33  ;;  %2806 = vmatmul.mubr.msk.bf16.gmra.mrb[16].mxu1 %vm395_vm1, %v330_v34  ;;  %v204_v33 = vld [vmem:[%s3129_s9 + $0xf8] sm:$0xff]  ;;  %v265_v34 = vld [vmem:[%s3129_s9 + $0x2e0] sm:$0xff] }
  0x3f   : > { %2685 = vmatprep.mubr.msk.bf16.mxu0 %vm3031_vm0, %v3030_v1  ;;  %2809 = vmatprep.mubr.msk.bf16.mxu1 %vm3031_vm0, %v3030_v1  ;;  %v310_v36 = vpack.c.bf16 %v204_v33, %v203_v32  ;;  %v341_v37 = vpack.c.bf16 %v266_v35, %v265_v34  ;;  %v286_v32 = vld [vmem:[%s3129_s9 + $0x388] sm:$0xff]  ;;  %v225_v35 = vld [vmem:[%s3129_s9 + $0x1a0] sm:$0xff] }
  0x46   : > { %2686 = vmatmul.mubr.msk.bf16.gmra.mrb[20].mxu0 %vm395_vm1, %v300_v39  ;;  %2810 = vmatmul.mubr.msk.bf16.gmra.mrb[20].mxu1 %vm395_vm1, %v331_v40  ;;  %v206_v39 = vld [vmem:[%s3129_s9 + $0x108] sm:$0xff]  ;;  %v267_v40 = vld [vmem:[%s3129_s9 + $0x2f0] sm:$0xff] }
  0x47   : > { %2689 = vmatprep.mubr.msk.bf16.mxu0 %vm3031_vm0, %v3030_v1  ;;  %2813 = vmatprep.mubr.msk.bf16.mxu1 %vm3031_vm0, %v3030_v1  ;;  %v311_v42 = vpack.c.bf16 %v206_v39, %v205_v38  ;;  %v342_v43 = vpack.c.bf16 %v268_v41, %v267_v40  ;;  %v288_v38 = vld [vmem:[%s3129_s9 + $0x398] sm:$0xff]  ;;  %v3401_v41 = vld [vmem:[%s3686_s2] ss:$0 sm:$0xff] }
  0x4e   : > { %2690 = vmatmul.mubr.msk.bf16.gmra.mrb[24].mxu0 %vm395_vm1, %v301_v45  ;;  %2814 = vmatmul.mubr.msk.bf16.gmra.mrb[24].mxu1 %vm395_vm1, %v332_v46  ;;  %v208_v45 = vld [vmem:[%s3129_s9 + $0x118] sm:$0xff]  ;;  %v269_v46 = vld [vmem:[%s3129_s9 + $0x300] sm:$0xff] }
  0x4f   : > { %2693 = vmatprep.mubr.msk.bf16.mxu0 %vm3031_vm0, %v3030_v1  ;;  %2817 = vmatprep.mubr.msk.bf16.mxu1 %vm3031_vm0, %v3030_v1  ;;  %v312_v48 = vpack.c.bf16 %v208_v45, %v207_v44  ;;  %v343_v49 = vpack.c.bf16 %v270_v47, %v269_v46  ;;  %v289_v44 = vld [vmem:[%s3129_s9 + $0x3a0] sm:$0xff]  ;;  %v290_v45 = vld [vmem:[%s3129_s9 + $0x3a8] sm:$0xff] }
  0x56   : > { %2694 = vmatmul.mubr.msk.bf16.gmra.mrb[28].mxu0 %vm395_vm1, %v302_v51  ;;  %2818 = vmatmul.mubr.msk.bf16.gmra.mrb[28].mxu1 %vm395_vm1, %v333_v52  ;;  %v210_v51 = vld [vmem:[%s3129_s9 + $0x128] sm:$0xff]  ;;  %v271_v52 = vld [vmem:[%s3129_s9 + $0x310] sm:$0xff] }
  0x57   : > { %2697 = vmatprep.mubr.msk.bf16.mxu0 %vm3031_vm0, %v3030_v1  ;;  %2821 = vmatprep.mubr.msk.bf16.mxu1 %vm3031_vm0, %v3030_v1  ;;  %v313_v54 = vpack.c.bf16 %v210_v51, %v209_v50  ;;  %v344_v55 = vpack.c.bf16 %v272_v53, %v271_v52  ;;  %v353_v53 = vpack.c.bf16 %v290_v45, %v289_v44 }
  0x5e   : > { %2698 = vmatmul.mubr.msk.bf16.gmra.mrb[32].mxu0 %vm395_vm1, %v303_v57  ;;  %2822 = vmatmul.mubr.msk.bf16.gmra.mrb[32].mxu1 %vm395_vm1, %v334_v58  ;;  %v212_v57 = vld [vmem:[%s3129_s9 + $0x138] sm:$0xff]  ;;  %v273_v58 = vld [vmem:[%s3129_s9 + $0x320] sm:$0xff] }
  0x5f   : > { %2701 = vmatprep.mubr.msk.bf16.mxu0 %vm3031_vm0, %v3030_v1  ;;  %2825 = vmatprep.mubr.msk.bf16.mxu1 %vm3031_vm0, %v3030_v1  ;;  %v314_v60 = vpack.c.bf16 %v212_v57, %v211_v56  ;;  %v345_v61 = vpack.c.bf16 %v274_v59, %v273_v58 }
  0x66   : > { %2702 = vmatmul.mubr.msk.bf16.gmra.mrb[36].mxu0 %vm395_vm1, %v304_v63  ;;  %2826 = vmatmul.mubr.msk.bf16.gmra.mrb[36].mxu1 %vm395_vm1, %v335_v0  ;;  %v214_v63 = vld [vmem:[%s3129_s9 + $0x148] sm:$0xff]  ;;  %v275_v0 = vld [vmem:[%s3129_s9 + $0x330] sm:$0xff] }
  0x67   : > { %2705 = vmatprep.mubr.msk.bf16.mxu0 %vm3031_vm0, %v3030_v1  ;;  %2829 = vmatprep.mubr.msk.bf16.mxu1 %vm3031_vm0, %v3030_v1  ;;  %v315_v3 = vpack.c.bf16 %v214_v63, %v213_v62  ;;  %v346_v4 = vpack.c.bf16 %v276_v2, %v275_v0  ;;  %v229_v0 = vld [vmem:[%s3129_s9 + $0x1c0] sm:$0xff]  ;;  %v230_v2 = vld [vmem:[%s3129_s9 + $0x1c8] sm:$0xff] }
  0x6e   : > { %2706 = vmatmul.mubr.msk.bf16.gmra.mrb[40].mxu0 %vm395_vm1, %v305_v6  ;;  %2830 = vmatmul.mubr.msk.bf16.gmra.mrb[40].mxu1 %vm395_vm1, %v336_v7  ;;  %v216_v6 = vld [vmem:[%s3129_s9 + $0x158] sm:$0xff]  ;;  %v277_v7 = vld [vmem:[%s3129_s9 + $0x340] sm:$0xff] }
  0x6f   : > { %2709 = vmatprep.mubr.msk.bf16.mxu0 %vm3031_vm0, %v3030_v1  ;;  %2833 = vmatprep.mubr.msk.bf16.mxu1 %vm3031_vm0, %v3030_v1  ;;  %v316_v9 = vpack.c.bf16 %v216_v6, %v215_v5  ;;  %v347_v10 = vpack.c.bf16 %v278_v8, %v277_v7 }
  0x76   : > { %2710 = vmatmul.mubr.msk.bf16.gmra.mrb[44].mxu0 %vm395_vm1, %v306_v12  ;;  %2834 = vmatmul.mubr.msk.bf16.gmra.mrb[44].mxu1 %vm395_vm1, %v337_v13  ;;  %v218_v12 = vld [vmem:[%s3129_s9 + $0x168] sm:$0xff]  ;;  %v279_v13 = vld [vmem:[%s3129_s9 + $0x350] sm:$0xff] }
  0x77   : > { %2713 = vmatprep.mubr.msk.bf16.mxu0 %vm3031_vm0, %v3030_v1  ;;  %2837 = vmatprep.mubr.msk.bf16.mxu1 %vm3031_vm0, %v3030_v1  ;;  %v317_v15 = vpack.c.bf16 %v218_v12, %v217_v11  ;;  %v348_v16 = vpack.c.bf16 %v280_v14, %v279_v13  ;;  %v323_v11 = vpack.c.bf16 %v230_v2, %v229_v0 }
  0x7e   : > { %2714 = vmatmul.mubr.msk.bf16.gmra.mrb[48].mxu0 %vm395_vm1, %v307_v18  ;;  %2838 = vmatmul.mubr.msk.bf16.gmra.mrb[48].mxu1 %vm395_vm1, %v338_v19  ;;  %v220_v18 = vld [vmem:[%s3129_s9 + $0x178] sm:$0xff]  ;;  %v281_v19 = vld [vmem:[%s3129_s9 + $0x360] sm:$0xff] }
  0x7f   : > { %2717 = vmatprep.mubr.msk.bf16.mxu0 %vm3031_vm0, %v3030_v1  ;;  %2841 = vmatprep.mubr.msk.bf16.mxu1 %vm3031_vm0, %v3030_v1  ;;  %v318_v21 = vpack.c.bf16 %v220_v18, %v219_v17  ;;  %v349_v22 = vpack.c.bf16 %v282_v20, %v281_v19 }
  0x86   : > { %2718 = vmatmul.mubr.msk.bf16.gmra.mrb[52].mxu0 %vm395_vm1, %v308_v24  ;;  %2842 = vmatmul.mubr.msk.bf16.gmra.mrb[52].mxu1 %vm395_vm1, %v339_v25  ;;  %v222_v24 = vld [vmem:[%s3129_s9 + $0x188] sm:$0xff]  ;;  %v283_v25 = vld [vmem:[%s3129_s9 + $0x370] sm:$0xff] }
  0x87   : > { %2721 = vmatprep.mubr.msk.bf16.mxu0 %vm3031_vm0, %v3030_v1  ;;  %2845 = vmatprep.mubr.msk.bf16.mxu1 %vm3031_vm0, %v3030_v1  ;;  %v319_v27 = vpack.c.bf16 %v222_v24, %v221_v23  ;;  %v350_v28 = vpack.c.bf16 %v284_v26, %v283_v25  ;;  %v231_v25 = vld [vmem:[%s3129_s9 + $0x1d0] sm:$0xff]  ;;  %v232_v26 = vld [vmem:[%s3129_s9 + $0x1d8] sm:$0xff] }
  0x8e   : > { %2722 = vmatmul.mubr.msk.bf16.gmra.mrb[56].mxu0 %vm395_vm1, %v309_v30  ;;  %2846 = vmatmul.mubr.msk.bf16.gmra.mrb[56].mxu1 %vm395_vm1, %v340_v31  ;;  %v224_v30 = vld [vmem:[%s3129_s9 + $0x198] sm:$0xff]  ;;  %v285_v31 = vld [vmem:[%s3129_s9 + $0x380] sm:$0xff] }
  0x8f   : > { %2725 = vmatprep.mubr.msk.bf16.mxu0 %vm3031_vm0, %v3030_v1  ;;  %2849 = vmatprep.mubr.msk.bf16.mxu1 %vm3031_vm0, %v3030_v1  ;;  %v320_v33 = vpack.c.bf16 %v224_v30, %v223_v29  ;;  %v351_v34 = vpack.c.bf16 %v286_v32, %v285_v31 }
  0x96   : > { %2726 = vmatmul.mubr.msk.bf16.gmra.mrb[60].mxu0 %vm395_vm1, %v310_v36  ;;  %2850 = vmatmul.mubr.msk.bf16.gmra.mrb[60].mxu1 %vm395_vm1, %v341_v37  ;;  %v226_v36 = vld [vmem:[%s3129_s9 + $0x1a8] sm:$0xff]  ;;  %v287_v37 = vld [vmem:[%s3129_s9 + $0x390] sm:$0xff] }
  0x97   : > { %2729 = vmatprep.mubr.msk.bf16.mxu0 %vm3031_vm0, %v3030_v1  ;;  %2853 = vmatprep.mubr.msk.bf16.mxu1 %vm3031_vm0, %v3030_v1  ;;  %v321_v39 = vpack.c.bf16 %v226_v36, %v225_v35  ;;  %v352_v40 = vpack.c.bf16 %v288_v38, %v287_v37  ;;  %v324_v35 = vpack.c.bf16 %v232_v26, %v231_v25 }
  0x9e   : > { %2730 = vmatmul.mubr.msk.bf16.gmra.mrb[64].mxu0 %vm395_vm1, %v311_v42  ;;  %2854 = vmatmul.mubr.msk.bf16.gmra.mrb[64].mxu1 %vm395_vm1, %v342_v43  ;;  %v227_v42 = vld [vmem:[%s3129_s9 + $0x1b0] sm:$0xff]  ;;  %v228_v43 = vld [vmem:[%s3129_s9 + $0x1b8] sm:$0xff] }
  0x9f   : > { %2733 = vmatprep.mubr.msk.bf16.mxu0 %vm3031_vm0, %v3030_v1  ;;  %2857 = vmatprep.mubr.msk.bf16.mxu1 %vm3031_vm0, %v3030_v1  ;;  %v322_v50 = vpack.c.bf16 %v228_v43, %v227_v42 }
  0xa6   : > { %2734 = vmatmul.mubr.msk.bf16.gmra.mrb[68].mxu0 %vm395_vm1, %v312_v48  ;;  %2858 = vmatmul.mubr.msk.bf16.gmra.mrb[68].mxu1 %vm395_vm1, %v343_v49 }
  0xa7   : > { %2737 = vmatprep.mubr.msk.bf16.mxu0 %vm3031_vm0, %v3030_v1  ;;  %2861 = vmatprep.mubr.msk.bf16.mxu1 %vm3031_vm0, %v3030_v1 }
  0xae   : > { %2738 = vmatmul.mubr.msk.bf16.gmra.mrb[72].mxu0 %vm395_vm1, %v313_v54  ;;  %2862 = vmatmul.mubr.msk.bf16.gmra.mrb[72].mxu1 %vm395_vm1, %v344_v55 }
  0xaf   : > { %2741 = vmatprep.mubr.msk.bf16.mxu0 %vm3031_vm0, %v3030_v1  ;;  %2865 = vmatprep.mubr.msk.bf16.mxu1 %vm3031_vm0, %v3030_v1 }
  0xb6   : > { %2742 = vmatmul.mubr.msk.bf16.gmra.mrb[76].mxu0 %vm395_vm1, %v314_v60  ;;  %2866 = vmatmul.mubr.msk.bf16.gmra.mrb[76].mxu1 %vm395_vm1, %v345_v61 }
  0xb7   : > { %2745 = vmatprep.mubr.msk.bf16.mxu0 %vm3031_vm0, %v3030_v1  ;;  %2869 = vmatprep.mubr.msk.bf16.mxu1 %vm3031_vm0, %v3030_v1 }
  0xbe   : > { %2746 = vmatmul.mubr.msk.bf16.gmra.mrb[80].mxu0 %vm395_vm1, %v315_v3  ;;  %2870 = vmatmul.mubr.msk.bf16.gmra.mrb[80].mxu1 %vm395_vm1, %v346_v4  ;;  %v291_v3 = vld [vmem:[%s3129_s9 + $0x3b0] sm:$0xff]  ;;  %v292_v4 = vld [vmem:[%s3129_s9 + $0x3b8] sm:$0xff] }
  0xbf   : > { %2749 = vmatprep.mubr.msk.bf16.mxu0 %vm3031_vm0, %v3030_v1  ;;  %2873 = vmatprep.mubr.msk.bf16.mxu1 %vm3031_vm0, %v3030_v1  ;;  %v354_v14 = vpack.c.bf16 %v292_v4, %v291_v3 }
  0xc6   : > { %2750 = vmatmul.mubr.msk.bf16.gmra.mrb[84].mxu0 %vm395_vm1, %v316_v9  ;;  %2874 = vmatmul.mubr.msk.bf16.gmra.mrb[84].mxu1 %vm395_vm1, %v347_v10 }
  0xc7   : > { %2753 = vmatprep.mubr.msk.bf16.mxu0 %vm3031_vm0, %v3030_v1  ;;  %2877 = vmatprep.mubr.msk.bf16.mxu1 %vm3031_vm0, %v3030_v1 }
  0xce   : > { %2754 = vmatmul.mubr.msk.bf16.gmra.mrb[88].mxu0 %vm395_vm1, %v317_v15  ;;  %2878 = vmatmul.mubr.msk.bf16.gmra.mrb[88].mxu1 %vm395_vm1, %v348_v16 }
  0xcf   : > { %2757 = vmatprep.mubr.msk.bf16.mxu0 %vm3031_vm0, %v3030_v1  ;;  %2881 = vmatprep.mubr.msk.bf16.mxu1 %vm3031_vm0, %v3030_v1 }
  0xd6   : > { %2758 = vmatmul.mubr.msk.bf16.gmra.mrb[92].mxu0 %vm395_vm1, %v318_v21  ;;  %2882 = vmatmul.mubr.msk.bf16.gmra.mrb[92].mxu1 %vm395_vm1, %v349_v22 }
  0xd7   : > { %2761 = vmatprep.mubr.msk.bf16.mxu0 %vm3031_vm0, %v3030_v1  ;;  %2885 = vmatprep.mubr.msk.bf16.mxu1 %vm3031_vm0, %v3030_v1 }
  0xde   : > { %2762 = vmatmul.mubr.msk.bf16.gmra.mrb[96].mxu0 %vm395_vm1, %v319_v27  ;;  %2886 = vmatmul.mubr.msk.bf16.gmra.mrb[96].mxu1 %vm395_vm1, %v350_v28  ;;  %v293_v27 = vld [vmem:[%s3129_s9 + $0x3c0] sm:$0xff]  ;;  %v294_v28 = vld [vmem:[%s3129_s9 + $0x3c8] sm:$0xff] }
  0xdf   : > { %2765 = vmatprep.mubr.msk.bf16.mxu0 %vm3031_vm0, %v3030_v1  ;;  %2889 = vmatprep.mubr.msk.bf16.mxu1 %vm3031_vm0, %v3030_v1  ;;  %v355_v38 = vpack.c.bf16 %v294_v28, %v293_v27 }
  0xe6   : > { %2766 = vmatmul.mubr.msk.bf16.gmra.mrb[100].mxu0 %vm395_vm1, %v320_v33  ;;  %2890 = vmatmul.mubr.msk.bf16.gmra.mrb[100].mxu1 %vm395_vm1, %v351_v34 }
  0xe7   : > { %2769 = vmatprep.mubr.msk.bf16.mxu0 %vm3031_vm0, %v3030_v1  ;;  %2893 = vmatprep.mubr.msk.bf16.mxu1 %vm3031_vm0, %v3030_v1 }
  0xee   : > { %2770 = vmatmul.mubr.msk.bf16.gmra.mrb[104].mxu0 %vm395_vm1, %v321_v39  ;;  %2894 = vmatmul.mubr.msk.bf16.gmra.mrb[104].mxu1 %vm395_vm1, %v352_v40 }
  0xef   : > { %2773 = vmatprep.mubr.msk.bf16.mxu0 %vm3031_vm0, %v3030_v1  ;;  %2897 = vmatprep.mubr.msk.bf16.mxu1 %vm3031_vm0, %v3030_v1 }
  0xf1   : > { %v613_v46 = vpop.f32.mrb[0].mxu0  ;;  %v861_v47 = vpop.f32.mrb[0].mxu1 }
  0xf2   : > { %v614_v48 = vadd.f32 %v3401_v41, %v613_v46  ;;  %v2667_v49 = vpop.f32.mrb[1].mxu0  ;;  %v862_v51 = vadd.f32 %v3401_v41, %v861_v47  ;;  %v2791_v52 = vpop.f32.mrb[1].mxu1 }
  0xf3   : > { %v616_v54 = vpop.f32.mrb[2].mxu0  ;;  %v864_v55 = vpop.f32.mrb[2].mxu1 }
  0xf4   : > { %v617_v56 = vadd.f32 %v3401_v41, %v616_v54  ;;  %v2668_v57 = vpop.f32.mrb[3].mxu0  ;;  %v1162_v58 = vmax.f32 %v862_v51, 0.0  ;;  %v865_v59 = vadd.f32 %v3401_v41, %v864_v55  ;;  %v2792_v60 = vpop.f32.mrb[3].mxu1  ;;  %v1100_v61 = vmax.f32 %v614_v48, 0.0  ;;  %v234_v51 = vld [vmem:[%s3129_s9 + $0x1e8] sm:$0xff] }
  0xf6   : > { %v1101_v62 = vmax.f32 %v617_v56, 0.0  ;;  %2774 = vmatmul.mubr.msk.bf16.gmra.mrb[108].mxu0 %vm395_vm1, %v322_v50  ;;  %v1163_v63 = vmax.f32 %v865_v59, 0.0  ;;  %2898 = vmatmul.mubr.msk.bf16.gmra.mrb[108].mxu1 %vm395_vm1, %v353_v53  ;;  %v233_v50 = vld [vmem:[%s3129_s9 + $0x1e0] sm:$0xff] }
  0xf7   : > { %2777 = vmatprep.mubr.msk.bf16.mxu0 %vm3031_vm0, %v3030_v1  ;;  %2901 = vmatprep.mubr.msk.bf16.mxu1 %vm3031_vm0, %v3030_v1 }
  0xf8   : > { %v2230_v5 = vpack.c.bf16 %v1101_v62, %v1100_v61  ;;  %v2385_v6 = vpack.c.bf16 %v1163_v63, %v1162_v58  ;;  %v325_v58 = vpack.c.bf16 %v234_v51, %v233_v50 }
  0xf9   : > { %v621_v7 = vpop.f32.mrb[4].mxu0  ;;  %v869_v8 = vpop.f32.mrb[4].mxu1 }
  0xfa   : > { %2231 = vst [vmem:[%s3429_s20] sm:$0xff] %v2230_v5   ;;  %2562 = vst [vmem:[%s3429_s20 + $0xf8] sm:$0xff] %v2385_v6   ;;  %v622_v9 = vadd.f32 %v3401_v41, %v621_v7  ;;  %v2671_v10 = vpop.f32.mrb[5].mxu0  ;;  %v870_v12 = vadd.f32 %v3401_v41, %v869_v8  ;;  %v2795_v13 = vpop.f32.mrb[5].mxu1 }
  0xfb   : > { %v624_v15 = vpop.f32.mrb[6].mxu0  ;;  %v872_v16 = vpop.f32.mrb[6].mxu1 }
  0xfc   : > { %v625_v17 = vadd.f32 %v3401_v41, %v624_v15  ;;  %v2672_v18 = vpop.f32.mrb[7].mxu0  ;;  %v1164_v19 = vmax.f32 %v870_v12, 0.0  ;;  %v873_v20 = vadd.f32 %v3401_v41, %v872_v16  ;;  %v2796_v21 = vpop.f32.mrb[7].mxu1  ;;  %v1102_v22 = vmax.f32 %v622_v9, 0.0 }
  0xfe   : > { %v1103_v23 = vmax.f32 %v625_v17, 0.0  ;;  %2778 = vmatmul.mubr.msk.bf16.gmra.mrb[112].mxu0 %vm395_vm1, %v323_v11  ;;  %v1165_v24 = vmax.f32 %v873_v20, 0.0  ;;  %2902 = vmatmul.mubr.msk.bf16.gmra.mrb[112].mxu1 %vm395_vm1, %v354_v14 }
  0xff   : > { %2781 = vmatprep.mubr.msk.bf16.mxu0 %vm3031_vm0, %v3030_v1  ;;  %2905 = vmatprep.mubr.msk.bf16.mxu1 %vm3031_vm0, %v3030_v1 }
 0x100   : > { %v2235_v29 = vpack.c.bf16 %v1103_v23, %v1102_v22  ;;  %v2390_v30 = vpack.c.bf16 %v1165_v24, %v1164_v19 }
 0x101   : > { %v629_v31 = vpop.f32.mrb[8].mxu0  ;;  %v877_v32 = vpop.f32.mrb[8].mxu1 }
 0x102   : > { %2532 = vst [vmem:[%s3429_s20 + $0x8] sm:$0xff] %v2235_v29   ;;  %2563 = vst [vmem:[%s3429_s20 + $0x100] sm:$0xff] %v2390_v30   ;;  %v630_v33 = vadd.f32 %v3401_v41, %v629_v31  ;;  %v2675_v34 = vpop.f32.mrb[9].mxu0  ;;  %v878_v36 = vadd.f32 %v3401_v41, %v877_v32  ;;  %v2799_v37 = vpop.f32.mrb[9].mxu1 }
 0x103   : > { %v632_v39 = vpop.f32.mrb[10].mxu0  ;;  %v880_v40 = vpop.f32.mrb[10].mxu1 }
 0x104   : > { %v633_v42 = vadd.f32 %v3401_v41, %v632_v39  ;;  %v2676_v43 = vpop.f32.mrb[11].mxu0  ;;  %v1166_v44 = vmax.f32 %v878_v36, 0.0  ;;  %v881_v45 = vadd.f32 %v3401_v41, %v880_v40  ;;  %v2800_v46 = vpop.f32.mrb[11].mxu1  ;;  %v1104_v47 = vmax.f32 %v630_v33, 0.0 }
 0x106   : > { %v1105_v48 = vmax.f32 %v633_v42, 0.0  ;;  %2782 = vmatmul.mubr.msk.bf16.gmra.mrb[116].mxu0 %vm395_vm1, %v324_v35  ;;  %v1167_v49 = vmax.f32 %v881_v45, 0.0  ;;  %2906 = vmatmul.mubr.msk.bf16.gmra.mrb[116].mxu1 %vm395_vm1, %v355_v38 }
 0x107   : > { %2785 = vmatprep.mubr.msk.bf16.mxu0 %vm3031_vm0, %v3030_v1 }
 0x108   : > { %v2240_v52 = vpack.c.bf16 %v1105_v48, %v1104_v47  ;;  %v2395_v53 = vpack.c.bf16 %v1167_v49, %v1166_v44 }
 0x109   : > { %v637_v54 = vpop.f32.mrb[12].mxu0  ;;  %v885_v55 = vpop.f32.mrb[12].mxu1 }
 0x10a   : > { %2533 = vst [vmem:[%s3429_s20 + $0x10] sm:$0xff] %v2240_v52   ;;  %2564 = vst [vmem:[%s3429_s20 + $0x108] sm:$0xff] %v2395_v53   ;;  %v638_v56 = vadd.f32 %v3401_v41, %v637_v54  ;;  %v2679_v57 = vpop.f32.mrb[13].mxu0  ;;  %v886_v59 = vadd.f32 %v3401_v41, %v885_v55  ;;  %v2803_v60 = vpop.f32.mrb[13].mxu1 }
 0x10b   : > { %v640_v61 = vpop.f32.mrb[14].mxu0  ;;  %v888_v62 = vpop.f32.mrb[14].mxu1 }
 0x10c   : > { %v641_v1 = vadd.f32 %v3401_v41, %v640_v61  ;;  %v2680_v63 = vpop.f32.mrb[15].mxu0  ;;  %v1168_v0 = vmax.f32 %v886_v59, 0.0  ;;  %v889_v2 = vadd.f32 %v3401_v41, %v888_v62  ;;  %v2804_v3 = vpop.f32.mrb[15].mxu1  ;;  %v1106_v4 = vmax.f32 %v638_v56, 0.0 }
 0x10e   : > { %v1107_v5 = vmax.f32 %v641_v1, 0.0  ;;  %2786 = vmatmul.mubr.msk.bf16.gmra.mrb[120].mxu0 %vm395_vm1, %v325_v58  ;;  %v1169_v6 = vmax.f32 %v889_v2, 0.0 }
 0x110   : > { %v2245_v7 = vpack.c.bf16 %v1107_v5, %v1106_v4  ;;  %v2400_v8 = vpack.c.bf16 %v1169_v6, %v1168_v0 }
 0x111   : > { %v645_v9 = vpop.f32.mrb[16].mxu0  ;;  %v893_v10 = vpop.f32.mrb[16].mxu1 }
 0x112   : > { %2534 = vst [vmem:[%s3429_s20 + $0x18] sm:$0xff] %v2245_v7   ;;  %2565 = vst [vmem:[%s3429_s20 + $0x110] sm:$0xff] %v2400_v8   ;;  %v646_v11 = vadd.f32 %v3401_v41, %v645_v9  ;;  %v2683_v12 = vpop.f32.mrb[17].mxu0  ;;  %v894_v13 = vadd.f32 %v3401_v41, %v893_v10  ;;  %v2807_v14 = vpop.f32.mrb[17].mxu1 }
 0x113   : > { %v648_v15 = vpop.f32.mrb[18].mxu0  ;;  %v896_v16 = vpop.f32.mrb[18].mxu1 }
 0x114   : > { %v649_v17 = vadd.f32 %v3401_v41, %v648_v15  ;;  %v2684_v18 = vpop.f32.mrb[19].mxu0  ;;  %v1170_v19 = vmax.f32 %v894_v13, 0.0  ;;  %v897_v20 = vadd.f32 %v3401_v41, %v896_v16  ;;  %v2808_v21 = vpop.f32.mrb[19].mxu1  ;;  %v1108_v22 = vmax.f32 %v646_v11, 0.0 }
 0x116   : > { %v1109_v23 = vmax.f32 %v649_v17, 0.0  ;;  %v1171_v24 = vmax.f32 %v897_v20, 0.0 }
 0x118   : > { %v2250_v25 = vpack.c.bf16 %v1109_v23, %v1108_v22  ;;  %v2405_v26 = vpack.c.bf16 %v1171_v24, %v1170_v19 }
 0x119   : > { %v653_v27 = vpop.f32.mrb[20].mxu0  ;;  %v901_v28 = vpop.f32.mrb[20].mxu1 }
 0x11a   : > { %2535 = vst [vmem:[%s3429_s20 + $0x20] sm:$0xff] %v2250_v25   ;;  %2566 = vst [vmem:[%s3429_s20 + $0x118] sm:$0xff] %v2405_v26   ;;  %v654_v29 = vadd.f32 %v3401_v41, %v653_v27  ;;  %v2687_v30 = vpop.f32.mrb[21].mxu0  ;;  %v902_v31 = vadd.f32 %v3401_v41, %v901_v28  ;;  %v2811_v32 = vpop.f32.mrb[21].mxu1 }
 0x11b   : > { %v656_v33 = vpop.f32.mrb[22].mxu0  ;;  %v904_v34 = vpop.f32.mrb[22].mxu1 }
 0x11c   : > { %v657_v35 = vadd.f32 %v3401_v41, %v656_v33  ;;  %v2688_v36 = vpop.f32.mrb[23].mxu0  ;;  %v1172_v37 = vmax.f32 %v902_v31, 0.0  ;;  %v905_v38 = vadd.f32 %v3401_v41, %v904_v34  ;;  %v2812_v39 = vpop.f32.mrb[23].mxu1  ;;  %v1110_v40 = vmax.f32 %v654_v29, 0.0 }
 0x11e   : > { %v1111_v42 = vmax.f32 %v657_v35, 0.0  ;;  %v1173_v43 = vmax.f32 %v905_v38, 0.0 }
 0x120   : > { %v2255_v44 = vpack.c.bf16 %v1111_v42, %v1110_v40  ;;  %v2410_v45 = vpack.c.bf16 %v1173_v43, %v1172_v37 }
 0x121   : > { %v661_v46 = vpop.f32.mrb[24].mxu0  ;;  %v909_v47 = vpop.f32.mrb[24].mxu1 }
 0x122   : > { %2536 = vst [vmem:[%s3429_s20 + $0x28] sm:$0xff] %v2255_v44   ;;  %2567 = vst [vmem:[%s3429_s20 + $0x120] sm:$0xff] %v2410_v45   ;;  %v662_v48 = vadd.f32 %v3401_v41, %v661_v46  ;;  %v2691_v49 = vpop.f32.mrb[25].mxu0  ;;  %v910_v50 = vadd.f32 %v3401_v41, %v909_v47  ;;  %v2815_v51 = vpop.f32.mrb[25].mxu1 }
 0x123   : > { %v664_v52 = vpop.f32.mrb[26].mxu0  ;;  %v912_v53 = vpop.f32.mrb[26].mxu1 }
 0x124   : > { %v665_v54 = vadd.f32 %v3401_v41, %v664_v52  ;;  %v2692_v55 = vpop.f32.mrb[27].mxu0  ;;  %v1174_v56 = vmax.f32 %v910_v50, 0.0  ;;  %v913_v57 = vadd.f32 %v3401_v41, %v912_v53  ;;  %v2816_v58 = vpop.f32.mrb[27].mxu1  ;;  %v1112_v59 = vmax.f32 %v662_v48, 0.0 }
 0x126   : > { %v1113_v60 = vmax.f32 %v665_v54, 0.0  ;;  %v1175_v61 = vmax.f32 %v913_v57, 0.0 }
 0x128   : > { %v2260_v62 = vpack.c.bf16 %v1113_v60, %v1112_v59  ;;  %v2415_v1 = vpack.c.bf16 %v1175_v61, %v1174_v56 }
 0x129   : > { %v669_v63 = vpop.f32.mrb[28].mxu0  ;;  %v917_v0 = vpop.f32.mrb[28].mxu1 }
 0x12a   : > { %2537 = vst [vmem:[%s3429_s20 + $0x30] sm:$0xff] %v2260_v62   ;;  %2568 = vst [vmem:[%s3429_s20 + $0x128] sm:$0xff] %v2415_v1   ;;  %v670_v2 = vadd.f32 %v3401_v41, %v669_v63  ;;  %v2695_v3 = vpop.f32.mrb[29].mxu0  ;;  %v918_v4 = vadd.f32 %v3401_v41, %v917_v0  ;;  %v2819_v5 = vpop.f32.mrb[29].mxu1 }
 0x12b   : > { %v672_v6 = vpop.f32.mrb[30].mxu0  ;;  %v920_v7 = vpop.f32.mrb[30].mxu1 }
 0x12c   : > { %v673_v8 = vadd.f32 %v3401_v41, %v672_v6  ;;  %v2696_v9 = vpop.f32.mrb[31].mxu0  ;;  %v1176_v10 = vmax.f32 %v918_v4, 0.0  ;;  %v921_v11 = vadd.f32 %v3401_v41, %v920_v7  ;;  %v2820_v12 = vpop.f32.mrb[31].mxu1  ;;  %v1114_v13 = vmax.f32 %v670_v2, 0.0 }
 0x12e   : > { %v1115_v14 = vmax.f32 %v673_v8, 0.0  ;;  %v1177_v15 = vmax.f32 %v921_v11, 0.0 }
 0x130   : > { %v2265_v16 = vpack.c.bf16 %v1115_v14, %v1114_v13  ;;  %v2420_v17 = vpack.c.bf16 %v1177_v15, %v1176_v10 }
 0x131   : > { %v677_v18 = vpop.f32.mrb[32].mxu0  ;;  %v925_v19 = vpop.f32.mrb[32].mxu1 }
 0x132   : > { %2538 = vst [vmem:[%s3429_s20 + $0x38] sm:$0xff] %v2265_v16   ;;  %2569 = vst [vmem:[%s3429_s20 + $0x130] sm:$0xff] %v2420_v17   ;;  %v678_v20 = vadd.f32 %v3401_v41, %v677_v18  ;;  %v2699_v21 = vpop.f32.mrb[33].mxu0  ;;  %v926_v22 = vadd.f32 %v3401_v41, %v925_v19  ;;  %v2823_v23 = vpop.f32.mrb[33].mxu1 }
 0x133   : > { %v680_v24 = vpop.f32.mrb[34].mxu0  ;;  %v928_v25 = vpop.f32.mrb[34].mxu1 }
 0x134   : > { %v681_v26 = vadd.f32 %v3401_v41, %v680_v24  ;;  %v2700_v27 = vpop.f32.mrb[35].mxu0  ;;  %v1178_v28 = vmax.f32 %v926_v22, 0.0  ;;  %v929_v29 = vadd.f32 %v3401_v41, %v928_v25  ;;  %v2824_v30 = vpop.f32.mrb[35].mxu1  ;;  %v1116_v31 = vmax.f32 %v678_v20, 0.0 }
 0x136   : > { %v1117_v32 = vmax.f32 %v681_v26, 0.0  ;;  %v1179_v33 = vmax.f32 %v929_v29, 0.0 }
 0x138   : > { %v2270_v34 = vpack.c.bf16 %v1117_v32, %v1116_v31  ;;  %v2425_v35 = vpack.c.bf16 %v1179_v33, %v1178_v28 }
 0x139   : > { %v685_v36 = vpop.f32.mrb[36].mxu0  ;;  %v933_v37 = vpop.f32.mrb[36].mxu1 }
 0x13a   : > { %2539 = vst [vmem:[%s3429_s20 + $0x40] sm:$0xff] %v2270_v34   ;;  %2570 = vst [vmem:[%s3429_s20 + $0x138] sm:$0xff] %v2425_v35   ;;  %v686_v38 = vadd.f32 %v3401_v41, %v685_v36  ;;  %v2703_v39 = vpop.f32.mrb[37].mxu0  ;;  %v934_v40 = vadd.f32 %v3401_v41, %v933_v37  ;;  %v2827_v42 = vpop.f32.mrb[37].mxu1 }
 0x13b   : > { %v688_v43 = vpop.f32.mrb[38].mxu0  ;;  %v936_v44 = vpop.f32.mrb[38].mxu1 }
 0x13c   : > { %v689_v45 = vadd.f32 %v3401_v41, %v688_v43  ;;  %v2704_v46 = vpop.f32.mrb[39].mxu0  ;;  %v1180_v47 = vmax.f32 %v934_v40, 0.0  ;;  %v937_v48 = vadd.f32 %v3401_v41, %v936_v44  ;;  %v2828_v49 = vpop.f32.mrb[39].mxu1  ;;  %v1118_v50 = vmax.f32 %v686_v38, 0.0 }
 0x13e   : > { %v1119_v51 = vmax.f32 %v689_v45, 0.0  ;;  %v1181_v52 = vmax.f32 %v937_v48, 0.0 }
 0x140   : > { %v2275_v53 = vpack.c.bf16 %v1119_v51, %v1118_v50  ;;  %v2430_v54 = vpack.c.bf16 %v1181_v52, %v1180_v47 }
 0x141   : > { %v693_v55 = vpop.f32.mrb[40].mxu0  ;;  %v941_v56 = vpop.f32.mrb[40].mxu1 }
 0x142   : > { %2540 = vst [vmem:[%s3429_s20 + $0x48] sm:$0xff] %v2275_v53   ;;  %2571 = vst [vmem:[%s3429_s20 + $0x140] sm:$0xff] %v2430_v54   ;;  %v694_v57 = vadd.f32 %v3401_v41, %v693_v55  ;;  %v2707_v58 = vpop.f32.mrb[41].mxu0  ;;  %v942_v59 = vadd.f32 %v3401_v41, %v941_v56  ;;  %v2831_v60 = vpop.f32.mrb[41].mxu1 }
 0x143   : > { %v696_v61 = vpop.f32.mrb[42].mxu0  ;;  %v944_v62 = vpop.f32.mrb[42].mxu1 }
 0x144   : > { %v697_v1 = vadd.f32 %v3401_v41, %v696_v61  ;;  %v2708_v63 = vpop.f32.mrb[43].mxu0  ;;  %v1182_v0 = vmax.f32 %v942_v59, 0.0  ;;  %v945_v2 = vadd.f32 %v3401_v41, %v944_v62  ;;  %v2832_v3 = vpop.f32.mrb[43].mxu1  ;;  %v1120_v4 = vmax.f32 %v694_v57, 0.0 }
 0x146   : > { %v1121_v5 = vmax.f32 %v697_v1, 0.0  ;;  %v1183_v6 = vmax.f32 %v945_v2, 0.0 }
 0x148   : > { %v2280_v7 = vpack.c.bf16 %v1121_v5, %v1120_v4  ;;  %v2435_v8 = vpack.c.bf16 %v1183_v6, %v1182_v0 }
 0x149   : > { %v701_v9 = vpop.f32.mrb[44].mxu0  ;;  %v949_v10 = vpop.f32.mrb[44].mxu1 }
 0x14a   : > { %2541 = vst [vmem:[%s3429_s20 + $0x50] sm:$0xff] %v2280_v7   ;;  %2572 = vst [vmem:[%s3429_s20 + $0x148] sm:$0xff] %v2435_v8   ;;  %v702_v11 = vadd.f32 %v3401_v41, %v701_v9  ;;  %v2711_v12 = vpop.f32.mrb[45].mxu0  ;;  %v950_v13 = vadd.f32 %v3401_v41, %v949_v10  ;;  %v2835_v14 = vpop.f32.mrb[45].mxu1 }
 0x14b   : > { %v704_v15 = vpop.f32.mrb[46].mxu0  ;;  %v952_v16 = vpop.f32.mrb[46].mxu1 }
 0x14c   : > { %v705_v17 = vadd.f32 %v3401_v41, %v704_v15  ;;  %v2712_v18 = vpop.f32.mrb[47].mxu0  ;;  %v1184_v19 = vmax.f32 %v950_v13, 0.0  ;;  %v953_v20 = vadd.f32 %v3401_v41, %v952_v16  ;;  %v2836_v21 = vpop.f32.mrb[47].mxu1  ;;  %v1122_v22 = vmax.f32 %v702_v11, 0.0 }
 0x14e   : > { %v1123_v23 = vmax.f32 %v705_v17, 0.0  ;;  %v1185_v24 = vmax.f32 %v953_v20, 0.0 }
 0x150   : > { %v2285_v25 = vpack.c.bf16 %v1123_v23, %v1122_v22  ;;  %v2440_v26 = vpack.c.bf16 %v1185_v24, %v1184_v19 }
 0x151   : > { %v709_v27 = vpop.f32.mrb[48].mxu0  ;;  %v957_v28 = vpop.f32.mrb[48].mxu1 }
 0x152   : > { %2542 = vst [vmem:[%s3429_s20 + $0x58] sm:$0xff] %v2285_v25   ;;  %2573 = vst [vmem:[%s3429_s20 + $0x150] sm:$0xff] %v2440_v26   ;;  %v710_v29 = vadd.f32 %v3401_v41, %v709_v27  ;;  %v2715_v30 = vpop.f32.mrb[49].mxu0  ;;  %v958_v31 = vadd.f32 %v3401_v41, %v957_v28  ;;  %v2839_v32 = vpop.f32.mrb[49].mxu1 }
 0x153   : > { %v712_v33 = vpop.f32.mrb[50].mxu0  ;;  %v960_v34 = vpop.f32.mrb[50].mxu1 }
 0x154   : > { %v713_v35 = vadd.f32 %v3401_v41, %v712_v33  ;;  %v2716_v36 = vpop.f32.mrb[51].mxu0  ;;  %v1186_v37 = vmax.f32 %v958_v31, 0.0  ;;  %v961_v38 = vadd.f32 %v3401_v41, %v960_v34  ;;  %v2840_v39 = vpop.f32.mrb[51].mxu1  ;;  %v1124_v40 = vmax.f32 %v710_v29, 0.0 }
 0x156   : > { %v1125_v42 = vmax.f32 %v713_v35, 0.0  ;;  %v1187_v43 = vmax.f32 %v961_v38, 0.0 }
 0x158   : > { %v2290_v44 = vpack.c.bf16 %v1125_v42, %v1124_v40  ;;  %v2445_v45 = vpack.c.bf16 %v1187_v43, %v1186_v37 }
 0x159   : > { %v717_v46 = vpop.f32.mrb[52].mxu0  ;;  %v965_v47 = vpop.f32.mrb[52].mxu1 }
 0x15a   : > { %2543 = vst [vmem:[%s3429_s20 + $0x60] sm:$0xff] %v2290_v44   ;;  %2574 = vst [vmem:[%s3429_s20 + $0x158] sm:$0xff] %v2445_v45   ;;  %v718_v48 = vadd.f32 %v3401_v41, %v717_v46  ;;  %v2719_v49 = vpop.f32.mrb[53].mxu0  ;;  %v966_v50 = vadd.f32 %v3401_v41, %v965_v47  ;;  %v2843_v51 = vpop.f32.mrb[53].mxu1 }
 0x15b   : > { %v720_v52 = vpop.f32.mrb[54].mxu0  ;;  %v968_v53 = vpop.f32.mrb[54].mxu1 }
 0x15c   : > { %v721_v54 = vadd.f32 %v3401_v41, %v720_v52  ;;  %v2720_v55 = vpop.f32.mrb[55].mxu0  ;;  %v1188_v56 = vmax.f32 %v966_v50, 0.0  ;;  %v969_v57 = vadd.f32 %v3401_v41, %v968_v53  ;;  %v2844_v58 = vpop.f32.mrb[55].mxu1  ;;  %v1126_v59 = vmax.f32 %v718_v48, 0.0 }
 0x15e   : > { %v1127_v60 = vmax.f32 %v721_v54, 0.0  ;;  %v1189_v61 = vmax.f32 %v969_v57, 0.0 }
 0x160   : > { %v2295_v62 = vpack.c.bf16 %v1127_v60, %v1126_v59  ;;  %v2450_v1 = vpack.c.bf16 %v1189_v61, %v1188_v56 }
 0x161   : > { %v725_v63 = vpop.f32.mrb[56].mxu0  ;;  %v973_v0 = vpop.f32.mrb[56].mxu1 }
 0x162   : > { %2544 = vst [vmem:[%s3429_s20 + $0x68] sm:$0xff] %v2295_v62   ;;  %2575 = vst [vmem:[%s3429_s20 + $0x160] sm:$0xff] %v2450_v1   ;;  %v726_v2 = vadd.f32 %v3401_v41, %v725_v63  ;;  %v2723_v3 = vpop.f32.mrb[57].mxu0  ;;  %v974_v4 = vadd.f32 %v3401_v41, %v973_v0  ;;  %v2847_v5 = vpop.f32.mrb[57].mxu1 }
 0x163   : > { %v728_v6 = vpop.f32.mrb[58].mxu0  ;;  %v976_v7 = vpop.f32.mrb[58].mxu1 }
 0x164   : > { %v729_v8 = vadd.f32 %v3401_v41, %v728_v6  ;;  %v2724_v9 = vpop.f32.mrb[59].mxu0  ;;  %v1190_v10 = vmax.f32 %v974_v4, 0.0  ;;  %v977_v11 = vadd.f32 %v3401_v41, %v976_v7  ;;  %v2848_v12 = vpop.f32.mrb[59].mxu1  ;;  %v1128_v13 = vmax.f32 %v726_v2, 0.0 }
 0x166   : > { %v1129_v14 = vmax.f32 %v729_v8, 0.0  ;;  %v1191_v15 = vmax.f32 %v977_v11, 0.0 }
 0x168   : > { %v2300_v16 = vpack.c.bf16 %v1129_v14, %v1128_v13  ;;  %v2455_v17 = vpack.c.bf16 %v1191_v15, %v1190_v10 }
 0x169   : > { %v733_v18 = vpop.f32.mrb[60].mxu0  ;;  %v981_v19 = vpop.f32.mrb[60].mxu1 }
 0x16a   : > { %2545 = vst [vmem:[%s3429_s20 + $0x70] sm:$0xff] %v2300_v16   ;;  %2576 = vst [vmem:[%s3429_s20 + $0x168] sm:$0xff] %v2455_v17   ;;  %v734_v20 = vadd.f32 %v3401_v41, %v733_v18  ;;  %v2727_v21 = vpop.f32.mrb[61].mxu0  ;;  %v982_v22 = vadd.f32 %v3401_v41, %v981_v19  ;;  %v2851_v23 = vpop.f32.mrb[61].mxu1 }
 0x16b   : > { %v736_v24 = vpop.f32.mrb[62].mxu0  ;;  %v984_v25 = vpop.f32.mrb[62].mxu1 }
 0x16c   : > { %v737_v26 = vadd.f32 %v3401_v41, %v736_v24  ;;  %v2728_v27 = vpop.f32.mrb[63].mxu0  ;;  %v1192_v28 = vmax.f32 %v982_v22, 0.0  ;;  %v985_v29 = vadd.f32 %v3401_v41, %v984_v25  ;;  %v2852_v30 = vpop.f32.mrb[63].mxu1  ;;  %v1130_v31 = vmax.f32 %v734_v20, 0.0 }
 0x16e   : > { %v1131_v32 = vmax.f32 %v737_v26, 0.0  ;;  %v1193_v33 = vmax.f32 %v985_v29, 0.0 }
 0x170   : > { %v2305_v34 = vpack.c.bf16 %v1131_v32, %v1130_v31  ;;  %v2460_v35 = vpack.c.bf16 %v1193_v33, %v1192_v28 }
 0x171   : > { %v741_v36 = vpop.f32.mrb[64].mxu0  ;;  %v989_v37 = vpop.f32.mrb[64].mxu1 }
 0x172   : > { %2546 = vst [vmem:[%s3429_s20 + $0x78] sm:$0xff] %v2305_v34   ;;  %2577 = vst [vmem:[%s3429_s20 + $0x170] sm:$0xff] %v2460_v35   ;;  %v742_v38 = vadd.f32 %v3401_v41, %v741_v36  ;;  %v2731_v39 = vpop.f32.mrb[65].mxu0  ;;  %v990_v40 = vadd.f32 %v3401_v41, %v989_v37  ;;  %v2855_v42 = vpop.f32.mrb[65].mxu1 }
 0x173   : > { %v744_v43 = vpop.f32.mrb[66].mxu0  ;;  %v992_v44 = vpop.f32.mrb[66].mxu1 }
 0x174   : > { %v745_v45 = vadd.f32 %v3401_v41, %v744_v43  ;;  %v2732_v46 = vpop.f32.mrb[67].mxu0  ;;  %v1194_v47 = vmax.f32 %v990_v40, 0.0  ;;  %v993_v48 = vadd.f32 %v3401_v41, %v992_v44  ;;  %v2856_v49 = vpop.f32.mrb[67].mxu1  ;;  %v1132_v50 = vmax.f32 %v742_v38, 0.0 }
 0x176   : > { %v1133_v51 = vmax.f32 %v745_v45, 0.0  ;;  %v1195_v52 = vmax.f32 %v993_v48, 0.0 }
 0x178   : > { %v2310_v53 = vpack.c.bf16 %v1133_v51, %v1132_v50  ;;  %v2465_v54 = vpack.c.bf16 %v1195_v52, %v1194_v47 }
 0x179   : > { %v749_v55 = vpop.f32.mrb[68].mxu0  ;;  %v997_v56 = vpop.f32.mrb[68].mxu1 }
 0x17a   : > { %2547 = vst [vmem:[%s3429_s20 + $0x80] sm:$0xff] %v2310_v53   ;;  %2578 = vst [vmem:[%s3429_s20 + $0x178] sm:$0xff] %v2465_v54   ;;  %v750_v57 = vadd.f32 %v3401_v41, %v749_v55  ;;  %v2735_v58 = vpop.f32.mrb[69].mxu0  ;;  %v998_v59 = vadd.f32 %v3401_v41, %v997_v56  ;;  %v2859_v60 = vpop.f32.mrb[69].mxu1 }
 0x17b   : > { %v752_v61 = vpop.f32.mrb[70].mxu0  ;;  %v1000_v62 = vpop.f32.mrb[70].mxu1 }
 0x17c   : > { %v753_v1 = vadd.f32 %v3401_v41, %v752_v61  ;;  %v2736_v63 = vpop.f32.mrb[71].mxu0  ;;  %v1196_v0 = vmax.f32 %v998_v59, 0.0  ;;  %v1001_v2 = vadd.f32 %v3401_v41, %v1000_v62  ;;  %v2860_v3 = vpop.f32.mrb[71].mxu1  ;;  %v1134_v4 = vmax.f32 %v750_v57, 0.0 }
 0x17e   : > { %v1135_v5 = vmax.f32 %v753_v1, 0.0  ;;  %v1197_v6 = vmax.f32 %v1001_v2, 0.0 }
 0x180   : > { %v2315_v7 = vpack.c.bf16 %v1135_v5, %v1134_v4  ;;  %v2470_v8 = vpack.c.bf16 %v1197_v6, %v1196_v0 }
 0x181   : > { %v757_v9 = vpop.f32.mrb[72].mxu0  ;;  %v1005_v10 = vpop.f32.mrb[72].mxu1 }
 0x182   : > { %2548 = vst [vmem:[%s3429_s20 + $0x88] sm:$0xff] %v2315_v7   ;;  %2579 = vst [vmem:[%s3429_s20 + $0x180] sm:$0xff] %v2470_v8   ;;  %v758_v11 = vadd.f32 %v3401_v41, %v757_v9  ;;  %v2739_v12 = vpop.f32.mrb[73].mxu0  ;;  %v1006_v13 = vadd.f32 %v3401_v41, %v1005_v10  ;;  %v2863_v14 = vpop.f32.mrb[73].mxu1 }
 0x183   : > { %v760_v15 = vpop.f32.mrb[74].mxu0  ;;  %v1008_v16 = vpop.f32.mrb[74].mxu1 }
 0x184   : > { %v761_v17 = vadd.f32 %v3401_v41, %v760_v15  ;;  %v2740_v18 = vpop.f32.mrb[75].mxu0  ;;  %v1198_v19 = vmax.f32 %v1006_v13, 0.0  ;;  %v1009_v20 = vadd.f32 %v3401_v41, %v1008_v16  ;;  %v2864_v21 = vpop.f32.mrb[75].mxu1  ;;  %v1136_v22 = vmax.f32 %v758_v11, 0.0 }
 0x186   : > { %v1137_v23 = vmax.f32 %v761_v17, 0.0  ;;  %v1199_v24 = vmax.f32 %v1009_v20, 0.0 }
 0x188   : > { %v2320_v25 = vpack.c.bf16 %v1137_v23, %v1136_v22  ;;  %v2475_v26 = vpack.c.bf16 %v1199_v24, %v1198_v19 }
 0x189   : > { %v765_v27 = vpop.f32.mrb[76].mxu0  ;;  %v1013_v28 = vpop.f32.mrb[76].mxu1 }
 0x18a   : > { %2549 = vst [vmem:[%s3429_s20 + $0x90] sm:$0xff] %v2320_v25   ;;  %2580 = vst [vmem:[%s3429_s20 + $0x188] sm:$0xff] %v2475_v26   ;;  %v766_v29 = vadd.f32 %v3401_v41, %v765_v27  ;;  %v2743_v30 = vpop.f32.mrb[77].mxu0  ;;  %v1014_v31 = vadd.f32 %v3401_v41, %v1013_v28  ;;  %v2867_v32 = vpop.f32.mrb[77].mxu1 }
 0x18b   : > { %v768_v33 = vpop.f32.mrb[78].mxu0  ;;  %v1016_v34 = vpop.f32.mrb[78].mxu1 }
 0x18c   : > { %v769_v35 = vadd.f32 %v3401_v41, %v768_v33  ;;  %v2744_v36 = vpop.f32.mrb[79].mxu0  ;;  %v1200_v37 = vmax.f32 %v1014_v31, 0.0  ;;  %v1017_v38 = vadd.f32 %v3401_v41, %v1016_v34  ;;  %v2868_v39 = vpop.f32.mrb[79].mxu1  ;;  %v1138_v40 = vmax.f32 %v766_v29, 0.0 }
 0x18e   : > { %v1139_v42 = vmax.f32 %v769_v35, 0.0  ;;  %v1201_v43 = vmax.f32 %v1017_v38, 0.0 }
 0x190   : > { %v2325_v44 = vpack.c.bf16 %v1139_v42, %v1138_v40  ;;  %v2480_v45 = vpack.c.bf16 %v1201_v43, %v1200_v37 }
 0x191   : > { %v773_v46 = vpop.f32.mrb[80].mxu0  ;;  %v1021_v47 = vpop.f32.mrb[80].mxu1 }
 0x192   : > { %2550 = vst [vmem:[%s3429_s20 + $0x98] sm:$0xff] %v2325_v44   ;;  %2581 = vst [vmem:[%s3429_s20 + $0x190] sm:$0xff] %v2480_v45   ;;  %v774_v48 = vadd.f32 %v3401_v41, %v773_v46  ;;  %v2747_v49 = vpop.f32.mrb[81].mxu0  ;;  %v1022_v50 = vadd.f32 %v3401_v41, %v1021_v47  ;;  %v2871_v51 = vpop.f32.mrb[81].mxu1 }
 0x193   : > { %v776_v52 = vpop.f32.mrb[82].mxu0  ;;  %v1024_v53 = vpop.f32.mrb[82].mxu1 }
 0x194   : > { %v777_v54 = vadd.f32 %v3401_v41, %v776_v52  ;;  %v2748_v55 = vpop.f32.mrb[83].mxu0  ;;  %v1202_v56 = vmax.f32 %v1022_v50, 0.0  ;;  %v1025_v57 = vadd.f32 %v3401_v41, %v1024_v53  ;;  %v2872_v58 = vpop.f32.mrb[83].mxu1  ;;  %v1140_v59 = vmax.f32 %v774_v48, 0.0 }
 0x196   : > { %v1141_v60 = vmax.f32 %v777_v54, 0.0  ;;  %v1203_v61 = vmax.f32 %v1025_v57, 0.0  ;;  %v3591_v57 = vld [vmem:[%s3686_s2] ss:$0 sm:$0xff] }
 0x198   : > { %v2330_v62 = vpack.c.bf16 %v1141_v60, %v1140_v59  ;;  %v2485_v1 = vpack.c.bf16 %v1203_v61, %v1202_v56 }
 0x199   : > { %v781_v63 = vpop.f32.mrb[84].mxu0  ;;  %v1029_v0 = vpop.f32.mrb[84].mxu1 }
 0x19a   : > { %2551 = vst [vmem:[%s3429_s20 + $0xa0] sm:$0xff] %v2330_v62   ;;  %2582 = vst [vmem:[%s3429_s20 + $0x198] sm:$0xff] %v2485_v1   ;;  %v782_v2 = vadd.f32 %v3401_v41, %v781_v63  ;;  %v2751_v3 = vpop.f32.mrb[85].mxu0  ;;  %v1030_v4 = vadd.f32 %v3401_v41, %v1029_v0  ;;  %v2875_v5 = vpop.f32.mrb[85].mxu1 }
 0x19b   : > { %v784_v6 = vpop.f32.mrb[86].mxu0  ;;  %v1032_v7 = vpop.f32.mrb[86].mxu1 }
 0x19c   : > { %v785_v8 = vadd.f32 %v3401_v41, %v784_v6  ;;  %v2752_v9 = vpop.f32.mrb[87].mxu0  ;;  %v1204_v10 = vmax.f32 %v1030_v4, 0.0  ;;  %v1033_v11 = vadd.f32 %v3401_v41, %v1032_v7  ;;  %v2876_v12 = vpop.f32.mrb[87].mxu1  ;;  %v1142_v13 = vmax.f32 %v782_v2, 0.0 }
 0x19e   : > { %v1143_v14 = vmax.f32 %v785_v8, 0.0  ;;  %v1205_v15 = vmax.f32 %v1033_v11, 0.0 }
 0x1a0   : > { %v2335_v16 = vpack.c.bf16 %v1143_v14, %v1142_v13  ;;  %v2490_v17 = vpack.c.bf16 %v1205_v15, %v1204_v10 }
 0x1a1   : > { %v789_v18 = vpop.f32.mrb[88].mxu0  ;;  %v1037_v19 = vpop.f32.mrb[88].mxu1 }
 0x1a2   : > { %2552 = vst [vmem:[%s3429_s20 + $0xa8] sm:$0xff] %v2335_v16   ;;  %2583 = vst [vmem:[%s3429_s20 + $0x1a0] sm:$0xff] %v2490_v17   ;;  %v790_v20 = vadd.f32 %v3401_v41, %v789_v18  ;;  %v2755_v21 = vpop.f32.mrb[89].mxu0  ;;  %v1038_v22 = vadd.f32 %v3401_v41, %v1037_v19  ;;  %v2879_v23 = vpop.f32.mrb[89].mxu1 }
 0x1a3   : > { %v792_v24 = vpop.f32.mrb[90].mxu0  ;;  %v1040_v25 = vpop.f32.mrb[90].mxu1 }
 0x1a4   : > { %v793_v26 = vadd.f32 %v3401_v41, %v792_v24  ;;  %v2756_v27 = vpop.f32.mrb[91].mxu0  ;;  %v1206_v28 = vmax.f32 %v1038_v22, 0.0  ;;  %v1041_v29 = vadd.f32 %v3401_v41, %v1040_v25  ;;  %v2880_v30 = vpop.f32.mrb[91].mxu1  ;;  %v1144_v31 = vmax.f32 %v790_v20, 0.0 }
 0x1a6   : > { %v1145_v32 = vmax.f32 %v793_v26, 0.0  ;;  %v1207_v33 = vmax.f32 %v1041_v29, 0.0 }
 0x1a8   : > { %v2340_v34 = vpack.c.bf16 %v1145_v32, %v1144_v31  ;;  %v2495_v35 = vpack.c.bf16 %v1207_v33, %v1206_v28 }
 0x1a9   : > { %v797_v36 = vpop.f32.mrb[92].mxu0  ;;  %v1045_v37 = vpop.f32.mrb[92].mxu1 }
 0x1aa   : > { %2553 = vst [vmem:[%s3429_s20 + $0xb0] sm:$0xff] %v2340_v34   ;;  %2584 = vst [vmem:[%s3429_s20 + $0x1a8] sm:$0xff] %v2495_v35   ;;  %v798_v38 = vadd.f32 %v3401_v41, %v797_v36  ;;  %v2759_v39 = vpop.f32.mrb[93].mxu0  ;;  %v1046_v40 = vadd.f32 %v3401_v41, %v1045_v37  ;;  %v2883_v42 = vpop.f32.mrb[93].mxu1 }
 0x1ab   : > { %v800_v43 = vpop.f32.mrb[94].mxu0  ;;  %v1048_v44 = vpop.f32.mrb[94].mxu1 }
 0x1ac   : > { %v801_v45 = vadd.f32 %v3401_v41, %v800_v43  ;;  %v2760_v46 = vpop.f32.mrb[95].mxu0  ;;  %v1208_v47 = vmax.f32 %v1046_v40, 0.0  ;;  %v1049_v48 = vadd.f32 %v3401_v41, %v1048_v44  ;;  %v2884_v49 = vpop.f32.mrb[95].mxu1  ;;  %v1146_v50 = vmax.f32 %v798_v38, 0.0 }
 0x1ae   : > { %v1147_v51 = vmax.f32 %v801_v45, 0.0  ;;  %v1209_v52 = vmax.f32 %v1049_v48, 0.0 }
 0x1b0   : > { %v2345_v53 = vpack.c.bf16 %v1147_v51, %v1146_v50  ;;  %v2500_v54 = vpack.c.bf16 %v1209_v52, %v1208_v47 }
 0x1b1   : > { %v805_v55 = vpop.f32.mrb[96].mxu0  ;;  %v1053_v56 = vpop.f32.mrb[96].mxu1 }
 0x1b2   : > { %2554 = vst [vmem:[%s3429_s20 + $0xb8] sm:$0xff] %v2345_v53   ;;  %2585 = vst [vmem:[%s3429_s20 + $0x1b0] sm:$0xff] %v2500_v54   ;;  %v806_v58 = vadd.f32 %v3591_v57, %v805_v55  ;;  %v2763_v59 = vpop.f32.mrb[97].mxu0  ;;  %v1054_v41 = vadd.f32 %v3591_v57, %v1053_v56  ;;  %v2887_v60 = vpop.f32.mrb[97].mxu1 }
 0x1b3   : > { %v808_v61 = vpop.f32.mrb[98].mxu0  ;;  %v1056_v62 = vpop.f32.mrb[98].mxu1 }
 0x1b4   : > { %v809_v1 = vadd.f32 %v3591_v57, %v808_v61  ;;  %v2764_v63 = vpop.f32.mrb[99].mxu0  ;;  %v1210_v0 = vmax.f32 %v1054_v41, 0.0  ;;  %v1057_v2 = vadd.f32 %v3591_v57, %v1056_v62  ;;  %v2888_v3 = vpop.f32.mrb[99].mxu1  ;;  %v1148_v4 = vmax.f32 %v806_v58, 0.0 }
 0x1b6   : > { %v1149_v5 = vmax.f32 %v809_v1, 0.0  ;;  %v1211_v6 = vmax.f32 %v1057_v2, 0.0 }
 0x1b8   : > { %v2350_v7 = vpack.c.bf16 %v1149_v5, %v1148_v4  ;;  %v2505_v8 = vpack.c.bf16 %v1211_v6, %v1210_v0 }
 0x1b9   : > { %v813_v9 = vpop.f32.mrb[100].mxu0  ;;  %v1061_v10 = vpop.f32.mrb[100].mxu1 }
 0x1ba   : > { %2555 = vst [vmem:[%s3429_s20 + $0xc0] sm:$0xff] %v2350_v7   ;;  %2586 = vst [vmem:[%s3429_s20 + $0x1b8] sm:$0xff] %v2505_v8   ;;  %v814_v11 = vadd.f32 %v3591_v57, %v813_v9  ;;  %v2767_v12 = vpop.f32.mrb[101].mxu0  ;;  %v1062_v13 = vadd.f32 %v3591_v57, %v1061_v10  ;;  %v2891_v14 = vpop.f32.mrb[101].mxu1 }
 0x1bb   : > { %v816_v15 = vpop.f32.mrb[102].mxu0  ;;  %v1064_v16 = vpop.f32.mrb[102].mxu1 }
 0x1bc   : > { %v817_v17 = vadd.f32 %v3591_v57, %v816_v15  ;;  %v2768_v18 = vpop.f32.mrb[103].mxu0  ;;  %v1212_v19 = vmax.f32 %v1062_v13, 0.0  ;;  %v1065_v20 = vadd.f32 %v3591_v57, %v1064_v16  ;;  %v2892_v21 = vpop.f32.mrb[103].mxu1  ;;  %v1150_v22 = vmax.f32 %v814_v11, 0.0 }
 0x1be   : > { %v1151_v23 = vmax.f32 %v817_v17, 0.0  ;;  %v1213_v24 = vmax.f32 %v1065_v20, 0.0 }
 0x1c0   : > { %v2355_v25 = vpack.c.bf16 %v1151_v23, %v1150_v22  ;;  %v2510_v26 = vpack.c.bf16 %v1213_v24, %v1212_v19 }
 0x1c1   : > { %v821_v27 = vpop.f32.mrb[104].mxu0  ;;  %v1069_v28 = vpop.f32.mrb[104].mxu1 }
 0x1c2   : > { %2556 = vst [vmem:[%s3429_s20 + $0xc8] sm:$0xff] %v2355_v25   ;;  %2587 = vst [vmem:[%s3429_s20 + $0x1c0] sm:$0xff] %v2510_v26   ;;  %v822_v29 = vadd.f32 %v3591_v57, %v821_v27  ;;  %v2771_v30 = vpop.f32.mrb[105].mxu0  ;;  %v1070_v31 = vadd.f32 %v3591_v57, %v1069_v28  ;;  %v2895_v32 = vpop.f32.mrb[105].mxu1 }
 0x1c3   : > { %v824_v33 = vpop.f32.mrb[106].mxu0  ;;  %v1072_v34 = vpop.f32.mrb[106].mxu1 }
 0x1c4   : > { %v825_v35 = vadd.f32 %v3591_v57, %v824_v33  ;;  %v2772_v36 = vpop.f32.mrb[107].mxu0  ;;  %v1214_v37 = vmax.f32 %v1070_v31, 0.0  ;;  %v1073_v38 = vadd.f32 %v3591_v57, %v1072_v34  ;;  %v2896_v39 = vpop.f32.mrb[107].mxu1  ;;  %v1152_v40 = vmax.f32 %v822_v29, 0.0 }
 0x1c6   : > { %v1153_v42 = vmax.f32 %v825_v35, 0.0  ;;  %v1215_v43 = vmax.f32 %v1073_v38, 0.0 }
 0x1c8   : > { %v2360_v44 = vpack.c.bf16 %v1153_v42, %v1152_v40  ;;  %v2515_v45 = vpack.c.bf16 %v1215_v43, %v1214_v37 }
 0x1c9   : > { %v829_v46 = vpop.f32.mrb[108].mxu0  ;;  %v1077_v47 = vpop.f32.mrb[108].mxu1 }
 0x1ca   : > { %2557 = vst [vmem:[%s3429_s20 + $0xd0] sm:$0xff] %v2360_v44   ;;  %2588 = vst [vmem:[%s3429_s20 + $0x1c8] sm:$0xff] %v2515_v45   ;;  %v830_v48 = vadd.f32 %v3591_v57, %v829_v46  ;;  %v2775_v49 = vpop.f32.mrb[109].mxu0  ;;  %v1078_v50 = vadd.f32 %v3591_v57, %v1077_v47  ;;  %v2899_v51 = vpop.f32.mrb[109].mxu1 }
 0x1cb   : > { %v832_v52 = vpop.f32.mrb[110].mxu0  ;;  %v1080_v53 = vpop.f32.mrb[110].mxu1 }
 0x1cc   : > { %v833_v54 = vadd.f32 %v3591_v57, %v832_v52  ;;  %v2776_v55 = vpop.f32.mrb[111].mxu0  ;;  %v1216_v56 = vmax.f32 %v1078_v50, 0.0  ;;  %v1081_v58 = vadd.f32 %v3591_v57, %v1080_v53  ;;  %v2900_v59 = vpop.f32.mrb[111].mxu1  ;;  %v1154_v41 = vmax.f32 %v830_v48, 0.0 }
 0x1ce   : > { %v1155_v60 = vmax.f32 %v833_v54, 0.0  ;;  %v1217_v61 = vmax.f32 %v1081_v58, 0.0 }
 0x1d0   : > { %v2365_v62 = vpack.c.bf16 %v1155_v60, %v1154_v41  ;;  %v2520_v1 = vpack.c.bf16 %v1217_v61, %v1216_v56 }
 0x1d1   : > { %v837_v63 = vpop.f32.mrb[112].mxu0  ;;  %v1085_v0 = vpop.f32.mrb[112].mxu1 }
 0x1d2   : > { %2558 = vst [vmem:[%s3429_s20 + $0xd8] sm:$0xff] %v2365_v62   ;;  %2589 = vst [vmem:[%s3429_s20 + $0x1d0] sm:$0xff] %v2520_v1   ;;  %v838_v2 = vadd.f32 %v3591_v57, %v837_v63  ;;  %v2779_v3 = vpop.f32.mrb[113].mxu0  ;;  %v1086_v4 = vadd.f32 %v3591_v57, %v1085_v0  ;;  %v2903_v5 = vpop.f32.mrb[113].mxu1 }
 0x1d3   : > { %v840_v6 = vpop.f32.mrb[114].mxu0  ;;  %v1088_v7 = vpop.f32.mrb[114].mxu1 }
 0x1d4   : > { %v841_v8 = vadd.f32 %v3591_v57, %v840_v6  ;;  %v2780_v9 = vpop.f32.mrb[115].mxu0  ;;  %v1218_v10 = vmax.f32 %v1086_v4, 0.0  ;;  %v1089_v11 = vadd.f32 %v3591_v57, %v1088_v7  ;;  %v2904_v12 = vpop.f32.mrb[115].mxu1  ;;  %v1156_v13 = vmax.f32 %v838_v2, 0.0 }
 0x1d6   : > { %v1157_v14 = vmax.f32 %v841_v8, 0.0  ;;  %v1219_v15 = vmax.f32 %v1089_v11, 0.0 }
 0x1d8   : > { %v2370_v16 = vpack.c.bf16 %v1157_v14, %v1156_v13  ;;  %v2525_v17 = vpack.c.bf16 %v1219_v15, %v1218_v10 }
 0x1d9   : > { %v845_v18 = vpop.f32.mrb[116].mxu0  ;;  %v1093_v19 = vpop.f32.mrb[116].mxu1 }
 0x1da   : > { %2559 = vst [vmem:[%s3429_s20 + $0xe0] sm:$0xff] %v2370_v16   ;;  %2590 = vst [vmem:[%s3429_s20 + $0x1d8] sm:$0xff] %v2525_v17   ;;  %v846_v20 = vadd.f32 %v3591_v57, %v845_v18  ;;  %v2783_v21 = vpop.f32.mrb[117].mxu0  ;;  %v1094_v22 = vadd.f32 %v3591_v57, %v1093_v19  ;;  %v2907_v23 = vpop.f32.mrb[117].mxu1 }
 0x1db   : > { %v848_v24 = vpop.f32.mrb[118].mxu0  ;;  %v1096_v25 = vpop.f32.mrb[118].mxu1 }
 0x1dc   : > { %v849_v26 = vadd.f32 %v3591_v57, %v848_v24  ;;  %v2784_v27 = vpop.f32.mrb[119].mxu0  ;;  %v1220_v28 = vmax.f32 %v1094_v22, 0.0  ;;  %v1097_v29 = vadd.f32 %v3591_v57, %v1096_v25  ;;  %v2908_v30 = vpop.f32.mrb[119].mxu1  ;;  %v1158_v31 = vmax.f32 %v846_v20, 0.0 }
 0x1de   : > { %v1159_v32 = vmax.f32 %v849_v26, 0.0  ;;  %v1221_v33 = vmax.f32 %v1097_v29, 0.0 }
 0x1e0   : > { %v2375_v34 = vpack.c.bf16 %v1159_v32, %v1158_v31  ;;  %v2530_v35 = vpack.c.bf16 %v1221_v33, %v1220_v28 }
 0x1e1   : > { %v853_v36 = vpop.f32.mrb[120].mxu0 }
 0x1e2   : > { %2560 = vst [vmem:[%s3429_s20 + $0xe8] sm:$0xff] %v2375_v34   ;;  %2591 = vst [vmem:[%s3429_s20 + $0x1e0] sm:$0xff] %v2530_v35   ;;  %v854_v37 = vadd.f32 %v3591_v57, %v853_v36  ;;  %v2787_v38 = vpop.f32.mrb[121].mxu0 }
 0x1e3   : > { %v856_v39 = vpop.f32.mrb[122].mxu0 }
 0x1e4   : > { %v857_v40 = vadd.f32 %v3591_v57, %v856_v39  ;;  %v2788_v42 = vpop.f32.mrb[123].mxu0  ;;  %v1160_v43 = vmax.f32 %v854_v37, 0.0 }
 0x1e6   : > { %v1161_v44 = vmax.f32 %v857_v40, 0.0 }
 0x1e8   : > { %v2380_v45 = vpack.c.bf16 %v1161_v44, %v1160_v43 }
 0x1ea   : > { %2561 = vst [vmem:[%s3429_s20 + $0xf0] sm:$0xff] %v2380_v45  }
 0x1eb   : > { %2979 = shalt.err (!%p2976_p3)
}
 0x1ec   : > { %s2980_s8 = scalar_lea.hbm %s3636_s30, 7808  ;;  %s2984_s11 = scalar_lea.hbm %s3687_s3, 31232 }
 0x1ed   : > { %p2981_p4 = scmp.ne.s32.totalorder %s3636_s30, %s2980_s8  ;;  %p2985_p9 = scmp.lt.u32.totalorder %s3636_s30, %s3687_s3 }
 0x1ee   : > { %p2986_p10 = scmp.lt.u32.totalorder %s2984_s11, %s2980_s8  ;;  %p2988_p12 = scmp.lt.u32.totalorder %s2980_s8, %s3636_s30 }
 0x1ef   : > { %p2982_p7 = pnand %p2981_p4, %p3093_p5 }
 0x1f0   : > { %p2987_p11 = por %p2986_p10, %p2985_p9 }
 0x1f1   : > { %p2983_p8 = pneg %p2982_p7 }
 0x1f2   : > { %p2989_p13 = por %p2988_p12, %p2987_p11 }
 0x1f4   : > { %p2990_p0 = pnand %p2989_p13, %p2983_p8 }
 0x1f6   : > { %2993 = shalt.err (!%p2990_p0)
}
 0x1f7   : > { %s3033_s20 = smov 64   ;;  %s3034_s24 = smov 4  }
 0x1f8   : > { %2918 = dma.vmem_to_hbm [thread:$0]  (%p3093_p5), %s3638_s27, 7808, %s3636_s30, %s3643_s16, %s3033_s20, %s3033_s20, %s3034_s24  }
 0x1f9 PF: > { %p2924_p1 = scmp.ge.s32.totalorder %s3028_s15, 2  ;;  %s1861_s25 = sand.u32 1, %s3016_s12  }
 0x1fa   : > { %s1862_s26 = scalar_lea.sflag [#allocation3], %s1861_s25 }
 0x1fb   : > { %p2921_p2 = pnand %p2924_p1, %p3097_p6 }
 0x1fd   : > { %3011 = dma.done.wait (!%p2921_p2), %s1862_s26, 7808  }
 0x1fe   : > { %3013 = vsyncadd (!%p2921_p2), %s1862_s26, 4294959488  ;;  %p13_p3 = scmp.ge.s32.totalorder %s3080_s18, 6   ;;  %s3690_s12 = smov %s3020_s13 }
 0x1ff   : > { %s3691_s13 = smov %s3024_s14  ;;  %s3692_s14 = smov %s3091_s21 }
 0x200   : > { %s3693_s15 = smov %s3080_s18  ;;  %15 = sbr.rel (!%p13_p3) target bundleno = 3 (0x3), region = 67 }
 0x207   :  { %1867 = vsyncpa [#allocation3], 1 }
 0x208   :  { %1869 = vsyncpa [#allocation3 + $0x1], 1 }

</bundles_post_ra>
